<compile_context>
chip_gen: v7x
topology: tpu7x:2x2x1
jax: 0.10.0
libtpu: 0.0.40
codegen_flags: <defaults>
</compile_context>

<pallas_src>
import functools
import math

import numpy as np
import jax
import jax.numpy as jnp
from jax import lax
from jax.experimental import pallas as pl
from jax.experimental.pallas import tpu as pltpu


# ----------------------------------------------------------------------------
# Generation-aware tiling configuration.
# ----------------------------------------------------------------------------
def _hw_config():
    try:
        vmem = int(pltpu.get_tpu_info().vmem_capacity_bytes)
    except Exception:
        vmem = 0
    if vmem > 96 * (1 << 20):      # v5e / v6e: 128 MiB VMEM, single TensorCore
        return dict(block_budget=16 << 20, vmem_limit=64 << 20,
                    prefer_two_steps=False)
    if vmem > 0:                   # v7x: 64 MiB VMEM, 2 TensorCores
        return dict(block_budget=8 << 20, vmem_limit=48 << 20,
                    prefer_two_steps=True)
    # unknown hardware: stay conservative
    return dict(block_budget=8 << 20, vmem_limit=32 << 20,
                prefer_two_steps=False)


def _cdiv(a, b):
    return -(-a // b)


def _choose_tiling(batch, channels, per_image_bytes, cfg, max_tb=32):
    """Pick (TB, grid, padded_batch).

    Largest batch tile within the double-buffered VMEM block budget; require
    >=2 grid steps only on 2-TensorCore chips (v7x); keep TB*channels 8-sublane
    aligned whenever the grid has more than one step; pad the batch instead of
    letting TB fall to 1 on awkward batch sizes."""
    align = 8 // math.gcd(channels, 8)
    tb = min(batch, max_tb,
             max(1, cfg["block_budget"] // (2 * per_image_bytes)))
    if cfg["prefer_two_steps"] and batch > 1:
        tb = min(tb, _cdiv(batch, 2))
    if tb >= batch:
        return batch, 1, batch                      # single step: full-array block
    tb = max(align, (tb // align) * align)
    grid = _cdiv(batch, tb)
    tb = align * _cdiv(_cdiv(batch, grid), align)   # rebalance across the steps
    grid = _cdiv(batch, tb)
    if grid == 1:
        return batch, 1, batch
    return tb, grid, grid * tb


# ----------------------------------------------------------------------------
# Pallas kernel 1: conv1 (1x1 conv).
# One block-diagonal (TB*f, TB*Cin) @ (TB*Cin, HW) MXU dot covers all TB images
# of a grid step; the per-map max (needed by softpool) is emitted as a tiny
# second output so XLA never re-reads x1 just to reduce it.
# ----------------------------------------------------------------------------
def _conv1x1_kernel(x_ref, w_ref, b_ref, o_ref, mx_ref):
    x1 = jnp.dot(w_ref[...], x_ref[...],
                 preferred_element_type=jnp.float32) + b_ref[...]
    o_ref[...] = x1
    mx_ref[...] = jnp.max(x1, axis=1, keepdims=True)


def conv1x1_pallas(x2d, w_bd, b_t, *, TB, grid, C, f, HW, cfg):
    BpC = x2d.shape[0]
    Bp = BpC // C
    return pl.pallas_call(
        _conv1x1_kernel,
        out_shape=(jax.ShapeDtypeStruct((Bp * f, HW), jnp.float32),
                   jax.ShapeDtypeStruct((Bp * f, 1), jnp.float32)),
        grid=(grid,),
        in_specs=[
            pl.BlockSpec((TB * C, HW), lambda i: (i, 0)),
            pl.BlockSpec((TB * f, TB * C), lambda i: (0, 0)),
            pl.BlockSpec((TB * f, 1), lambda i: (0, 0)),
        ],
        out_specs=(pl.BlockSpec((TB * f, HW), lambda i: (i, 0)),
                   pl.BlockSpec((TB * f, 1), lambda i: (i, 0))),
        compiler_params=pltpu.CompilerParams(
            dimension_semantics=("parallel",),
            vmem_limit_bytes=cfg["vmem_limit"]),
        cost_estimate=pl.CostEstimate(
            flops=2 * Bp * HW * C * f,
            transcendentals=0,
            bytes_accessed=4 * (Bp * HW * (C + f) + TB * TB * f * C)),
    )(x2d, w_bd, b_t)


# ----------------------------------------------------------------------------
# Pallas kernel 2: fused epilogue.
#   y   = bilinear_upsample(y_small)      (in-kernel: y_small @ M, M precomputed)
#   z   = x * y
#   g   = sigmoid(x[:, 0:1]) per image    (0/1 selection matmul replicates each
#                                          image's channel-0 row to all C rows)
#   out = z*g + propagate_conv3x3(z) + b  (9 lane-rolls + border masks +
#                                          block-diagonal tap dots over TB imgs)
# ----------------------------------------------------------------------------
def _epilogue_kernel(x_ref, ys_ref, up_ref, w_ref, gsel_ref, b_ref, m_ref,
                     o_ref, *, W, HW):
    x2 = x_ref[...]                                      # (TB*C, HW)
    y2 = jnp.dot(ys_ref[...], up_ref[...],               # fused bilinear upsample
                 preferred_element_type=jnp.float32)
    z2 = x2 * y2
    g2 = jax.nn.sigmoid(                                 # per-image channel-0 gate
        jnp.dot(gsel_ref[...], x2, preferred_element_type=jnp.float32))
    m = m_ref[...]                                       # (9, HW) border masks

    # 3x3 propagate conv: centre tap initialises the accumulator; each other tap
    # is one roll + one mask-mul + one block-diag dot covering all TB images.
    acc = jnp.dot(w_ref[4], z2, preferred_element_type=jnp.float32)
    for k in range(9):
        if k == 4:
            continue
        s = (k // 3 - 1) * W + (k % 3 - 1)               # flattened-HW tap offset
        tap = pltpu.roll(z2, shift=(-s) % HW, axis=1) * m[k:k + 1, :]
        acc = acc + jnp.dot(w_ref[k], tap, preferred_element_type=jnp.float32)

    o_ref[...] = z2 * g2 + acc + b_ref[...]


def epilogue_pallas(x2d, ys2d, up_mat, wp_bd, gate_sel, bp_t, masks,
                    *, TB, grid, C, W, HW, cfg):
    BpC = x2d.shape[0]
    HsWs = ys2d.shape[1]
    kernel = functools.partial(_epilogue_kernel, W=W, HW=HW)
    return pl.pallas_call(
        kernel,
        out_shape=jax.ShapeDtypeStruct((BpC, HW), jnp.float32),
        grid=(grid,),
        in_specs=[
            pl.BlockSpec((TB * C, HW), lambda i: (i, 0)),
            pl.BlockSpec((TB * C, HsWs), lambda i: (i, 0)),
            pl.BlockSpec((HsWs, HW), lambda i: (0, 0)),
            pl.BlockSpec((9, TB * C, TB * C), lambda i: (0, 0, 0)),
            pl.BlockSpec((TB * C, TB * C), lambda i: (0, 0)),
            pl.BlockSpec((TB * C, 1), lambda i: (0, 0)),
            pl.BlockSpec((9, HW), lambda i: (0, 0)),
        ],
        out_specs=pl.BlockSpec((TB * C, HW), lambda i: (i, 0)),
        compiler_params=pltpu.CompilerParams(
            dimension_semantics=("parallel",),
            vmem_limit_bytes=cfg["vmem_limit"]),
        cost_estimate=pl.CostEstimate(
            flops=2 * BpC * HW * (10 * TB * C + HsWs),
            transcendentals=BpC * HW,
            bytes_accessed=4 * (2 * BpC * HW + BpC * HsWs + 9 * HW)),
    )(x2d, ys2d, up_mat, wp_bd, gate_sel, bp_t, masks)


# ----------------------------------------------------------------------------
# Host-side constant builders.
# ----------------------------------------------------------------------------
def make_tap_masks(H, W):
    """(9, H*W) f32 validity masks for the 3x3 taps on the flattened HW axis."""
    p = np.arange(H * W)
    hh, ww = p // W, p % W
    masks = np.zeros((9, H * W), np.float32)
    for k in range(9):
        oy, ox = k // 3 - 1, k % 3 - 1
        valid = ((hh + oy >= 0) & (hh + oy < H)
                 & (ww + ox >= 0) & (ww + ox < W))
        masks[k] = valid.astype(np.float32)
    return jnp.asarray(masks)


def make_bilinear_matrix(Hs, Ws, H, W):
    """(Hs*Ws, H*W) matrix M with y_up.flat = y_small.flat @ M, matching
    F.interpolate(mode='bilinear', align_corners=False)."""
    def axis_weights(out_size, in_size):
        A = np.zeros((out_size, in_size), np.float64)
        scale = in_size / out_size
        for o in range(out_size):
            src = min(max((o + 0.5) * scale - 0.5, 0.0), in_size - 1)
            i0 = int(np.floor(src))
            i1 = min(i0 + 1, in_size - 1)
            frac = src - i0
            A[o, i0] += 1.0 - frac
            A[o, i1] += frac
        return A
    Ah = axis_weights(H, Hs)                         # (H, Hs)
    Aw = axis_weights(W, Ws)                         # (W, Ws)
    M = np.einsum("hi,wj->ijhw", Ah, Aw).reshape(Hs * Ws, H * W)
    return jnp.asarray(M.astype(np.float32))


def make_gate_select(TB, C):
    """(TB*C, TB*C) 0/1 matrix replicating each image's channel-0 row to all C rows."""
    sel = np.zeros((TB * C, TB * C), np.float32)
    rows = np.arange(TB * C)
    sel[rows, (rows // C) * C] = 1.0
    return jnp.asarray(sel)


# ----------------------------------------------------------------------------
# Tiny mid-resolution path (softpool 7/3, conv2 3x3/s2, conv3 3x3, sigmoid).
# Operates on 4x4 / 2x2 maps.
# TODO(synk): intentionally left in XLA — at these sizes a Pallas kernel would
# be pure launch overhead.
# ----------------------------------------------------------------------------
def conv2d_nchw(x, w_oihw, b, stride, padding):
    out = lax.conv_general_dilated(
        x, w_oihw, window_strides=(stride, stride), padding=padding,
        dimension_numbers=("NCHW", "OIHW", "NCHW"))
    return out + b[None, :, None, None]


def softpool2d(x, per_map_max=None, kernel=7, stride=3, pad=1):
    # AvgPool(count_include_pad=False) ratio: the valid-count cancels, so it is
    # sum(e*x)/sum(e) over each (zero-padded) window.  Subtracting the per-map
    # max is mathematically a no-op but keeps exp() finite; the Pallas conv1x1
    # kernel already emits that max so XLA does not re-reduce x1 for it.
    if per_map_max is None:
        per_map_max = jnp.max(x, axis=(2, 3), keepdims=True)
    e = jnp.exp(x - per_map_max)
    win = (1, 1, kernel, kernel)
    strides = (1, 1, stride, stride)
    padding = ((0, 0), (0, 0), (pad, pad), (pad, pad))
    num = lax.reduce_window(e * x, 0.0, lax.add, win, strides, padding)
    den = lax.reduce_window(e, 0.0, lax.add, win, strides, padding)
    return num / den


def _mid_small(x1, x1_max, params):
    x2 = softpool2d(x1, x1_max)
    x3 = conv2d_nchw(x2, params["w2_oihw"], params["b2"], 2, ((1, 1), (1, 1)))
    x4 = conv2d_nchw(x3, params["w3_oihw"], params["b3"], 1, ((1, 1), (1, 1)))
    return jax.nn.sigmoid(x4)


def bilinear_resize_nchw(y, H, W):
    # Gather-based upsample — reference path only (the Pallas path fuses the
    # upsample as a matmul inside the epilogue kernel).
    B, C, Hs, Ws = y.shape

    def coords(out_size, in_size):
        scale = in_size / out_size
        src = (jnp.arange(out_size, dtype=jnp.float32) + 0.5) * scale - 0.5
        src = jnp.clip(src, 0.0, in_size - 1)
        i0 = jnp.floor(src).astype(jnp.int32)
        i1 = jnp.minimum(i0 + 1, in_size - 1)
        frac = (src - i0.astype(jnp.float32)).astype(y.dtype)
        return i0, i1, frac

    i0, i1, fh = coords(H, Hs)
    j0, j1, fw = coords(W, Ws)
    top, bot = y[:, :, i0], y[:, :, i1]
    rows = (top * (1 - fh)[None, None, :, None]
            + bot * fh[None, None, :, None])
    left, right = rows[:, :, :, j0], rows[:, :, :, j1]
    return (left * (1 - fw)[None, None, None, :]
            + right * fw[None, None, None, :])


# ----------------------------------------------------------------------------
# Parameters (deterministic, PyTorch-default-style uniform init, OIHW shapes).
# ----------------------------------------------------------------------------
def init_params(key, channels, f=16):
    ks = jax.random.split(key, 8)

    def wb(kw, kb, shape):
        fan_in = shape[1] * shape[2] * shape[3]
        bound = 1.0 / np.sqrt(fan_in)
        w = jax.random.uniform(kw, shape, jnp.float32, -bound, bound)
        b = jax.random.uniform(kb, (shape[0],), jnp.float32, -bound, bound)
        return w, b

    w1, b1 = wb(ks[0], ks[1], (f, channels, 1, 1))
    w2, b2 = wb(ks[2], ks[3], (f, f, 3, 3))
    w3, b3 = wb(ks[4], ks[5], (channels, f, 3, 3))
    wp, bp = wb(ks[6], ks[7], (channels, channels, 3, 3))

    return dict(
        w1_oihw=w1, b1=b1,
        w1_mat=w1[:, :, 0, 0],                                   # (f, Cin)
        w2_oihw=w2, b2=b2,
        w3_oihw=w3, b3=b3,
        wp_oihw=wp, bp=bp,
        # wp_taps[k, o, i] = wp[o, i, k//3, k%3]
        wp_taps=jnp.transpose(wp, (2, 3, 0, 1)).reshape(9, channels, channels),
    )


# ----------------------------------------------------------------------------
# Forward pass (Pallas-accelerated) and pure-JAX reference.
# ----------------------------------------------------------------------------
def _prep(x):
    orig_shape = x.shape
    if x.ndim == 5:
        n, s, c, h, w = x.shape
        x = x.reshape(n * s, c, h, w)
    elif x.ndim != 4:
        raise ValueError("Input tensor must be 4D or 5D")
    return x, orig_shape


def attention_propagation_forward(x, params):
    x4d, orig_shape = _prep(x)
    B, C, H, W = x4d.shape
    HW = H * W
    f = params["b1"].shape[0]

    cfg = _hw_config()
    per_image_bytes = 4 * HW * (2 * C + f)          # x + out + x1 streams
    TB, grid, Bp = _choose_tiling(B, C, per_image_bytes, cfg)

    x_flat = x4d.reshape(B, C, HW)
    if Bp != B:                                     # pad batch instead of TB->1
        x_flat = jnp.pad(x_flat, ((0, Bp - B), (0, 0), (0, 0)))
    x2d = x_flat.reshape(Bp * C, HW)                # rows=(image,channel), HW on lanes

    eye_tb = jnp.eye(TB, dtype=jnp.float32)

    # conv1 (1x1) + per-map max: one block-diag MXU dot per grid step.
    w1_bd = jnp.einsum("bd,oc->bodc", eye_tb,
                       params["w1_mat"]).reshape(TB * f, TB * C)
    b1_t = jnp.tile(params["b1"], TB).reshape(TB * f, 1)
    x1_2d, x1_max = conv1x1_pallas(x2d, w1_bd, b1_t, TB=TB, grid=grid,
                                   C=C, f=f, HW=HW, cfg=cfg)

    # tiny mid-resolution path (XLA): softpool -> conv2 -> conv3 -> sigmoid.
    y_small = _mid_small(x1_2d.reshape(Bp, f, H, W),
                         x1_max.reshape(Bp, f, 1, 1), params)
    Hs, Ws = int(y_small.shape[2]), int(y_small.shape[3])
    ys2d = y_small.reshape(Bp * C, Hs * Ws)

    # fused epilogue: upsample + gate + 3x3 propagate conv.
    up_mat = make_bilinear_matrix(Hs, Ws, H, W)
    masks = make_tap_masks(H, W)
    wp_bd = jnp.einsum("bd,koi->kbodi", eye_tb,
                       params["wp_taps"]).reshape(9, TB * C, TB * C)
    bp_t = jnp.tile(params["bp"], TB).reshape(TB * C, 1)
    gate_sel = make_gate_select(TB, C)

    out2d = epilogue_pallas(x2d, ys2d, up_mat, wp_bd, gate_sel, bp_t, masks,
                            TB=TB, grid=grid, C=C, W=W, HW=HW, cfg=cfg)
    out = out2d.reshape(Bp, C, H, W)[:B]
    return out.reshape(orig_shape)


def reference_forward(x, params):
    x4d, orig_shape = _prep(x)
    _, _, H, W = x4d.shape
    x1 = conv2d_nchw(x4d, params["w1_oihw"], params["b1"], 1, ((0, 0), (0, 0)))
    y_small = _mid_small(x1, None, params)
    y = bilinear_resize_nchw(y_small, H, W)
    z = x4d * y
    xp = conv2d_nchw(z, params["wp_oihw"], params["bp"], 1, ((1, 1), (1, 1)))
    g = jax.nn.sigmoid(x4d[:, 0:1])
    return (z * g + xp).reshape(orig_shape)


# ----------------------------------------------------------------------------
if __name__ == "__main__":
    key = jax.random.PRNGKey(0)
    kp, kx = jax.random.split(key)

    channels, f = 4, 16
    N, S, H, W = 2, 2, 16, 16

    params = init_params(kp, channels, f)
    x = jax.random.normal(kx, (N, S, channels, H, W), jnp.float32)

    fwd = jax.jit(attention_propagation_forward)
    out = jax.block_until_ready(fwd(x, params))
    ref = jax.block_until_ready(jax.jit(reference_forward)(x, params))

    assert out.shape == x.shape
    # All-f32 path; remaining difference is accumulation-order rounding between
    # the Pallas tap/blockdiag dots and lax.conv.
    np.testing.assert_allclose(np.asarray(out), np.asarray(ref),
                               rtol=2e-5, atol=2e-5)
    print("KERNEL_OK")
</pallas_src>

<mosaic_0001>
module attributes {stable_mosaic.version = 11 : i64} {
  func.func @_conv1x1_kernel(%arg0: i32, %arg1: memref<16x256xf32, #tpu.memory_space<vmem>>, %arg2: memref<64x16xf32, #tpu.memory_space<vmem>>, %arg3: memref<64x1xf32, #tpu.memory_space<vmem>>, %arg4: memref<64x256xf32, #tpu.memory_space<vmem>>, %arg5: memref<64x1xf32, #tpu.memory_space<vmem>>) attributes {dimension_semantics = [#tpu.dimension_semantics<parallel>], iteration_bounds = array<i64: 1>, scalar_prefetch = 0 : i64, scratch_operands = 0 : i64, tpu.core_type = #tpu.core_type<tc>, window_params = [{transform_indices = @transform_0, window_bounds = array<i64: 16, 256>}, {pipeline_mode = #tpu.pipeline_mode<synchronous>, transform_indices = @transform_1, window_bounds = array<i64: 64, 16>}, {pipeline_mode = #tpu.pipeline_mode<synchronous>, transform_indices = @transform_2, window_bounds = array<i64: 64, 1>}, {transform_indices = @transform_3, window_bounds = array<i64: 64, 256>}, {transform_indices = @transform_4, window_bounds = array<i64: 64, 1>}]} {
    %c0 = arith.constant 0 : index
    %c0_0 = arith.constant 0 : index
    %0 = vector.load %arg2[%c0, %c0_0] : memref<64x16xf32, #tpu.memory_space<vmem>>, vector<64x16xf32>
    %c0_1 = arith.constant 0 : index
    %c0_2 = arith.constant 0 : index
    %1 = vector.load %arg1[%c0_1, %c0_2] : memref<16x256xf32, #tpu.memory_space<vmem>>, vector<16x256xf32>
    %cst = arith.constant dense<0.000000e+00> : vector<64x256xf32>
    %2 = tpu.matmul %0, %1, %cst {dimension_numbers = #tpu.dot_dimension_numbers<[1], [0], [0], [1], [0, 0, 1, 1], [], []>} : vector<64x16xf32>, vector<16x256xf32>, vector<64x256xf32> -> vector<64x256xf32>
    %c0_3 = arith.constant 0 : index
    %c0_4 = arith.constant 0 : index
    %3 = vector.load %arg3[%c0_3, %c0_4] : memref<64x1xf32, #tpu.memory_space<vmem>>, vector<64x1xf32>
    %4 = vector.broadcast %3 : vector<64x1xf32> to vector<64x256xf32>
    %5 = arith.addf %2, %4 : vector<64x256xf32>
    %c0_5 = arith.constant 0 : index
    %c0_6 = arith.constant 0 : index
    %6 = vector.load %arg4[%c0_5, %c0_6] : memref<64x256xf32, #tpu.memory_space<vmem>>, vector<64x256xf32>
    tpu.vector_store %arg4[%c0_5, %c0_6], %5 {strides = array<i32>} : memref<64x256xf32, #tpu.memory_space<vmem>>, vector<64x256xf32>,
    %cst_7 = arith.constant dense<0xFF800000> : vector<64xf32>
    %7 = vector.multi_reduction <maximumf>, %5, %cst_7 [1] : vector<64x256xf32> to vector<64xf32>
    %8 = vector.shape_cast %7 : vector<64xf32> to vector<64x1xf32>
    %c0_8 = arith.constant 0 : index
    %c0_9 = arith.constant 0 : index
    %9 = vector.load %arg5[%c0_8, %c0_9] : memref<64x1xf32, #tpu.memory_space<vmem>>, vector<64x1xf32>
    tpu.vector_store %arg5[%c0_8, %c0_9], %8 {strides = array<i32>} : memref<64x1xf32, #tpu.memory_space<vmem>>, vector<64x1xf32>,
    return
  }
  func.func @transform_0(%arg0: i32) -> (i32, i32) {
    %c0_i32 = arith.constant 0 : i32
    %c0_i32_0 = arith.constant 0 : i32
    return %arg0, %c0_i32 : i32, i32
  }
  func.func @transform_1(%arg0: i32) -> (i32, i32) {
    %c0_i32 = arith.constant 0 : i32
    %c0_i32_0 = arith.constant 0 : i32
    %c0_i32_1 = arith.constant 0 : i32
    return %c0_i32, %c0_i32_0 : i32, i32
  }
  func.func @transform_2(%arg0: i32) -> (i32, i32) {
    %c0_i32 = arith.constant 0 : i32
    %c0_i32_0 = arith.constant 0 : i32
    %c0_i32_1 = arith.constant 0 : i32
    return %c0_i32, %c0_i32_0 : i32, i32
  }
  func.func @transform_3(%arg0: i32) -> (i32, i32) {
    %c0_i32 = arith.constant 0 : i32
    %c0_i32_0 = arith.constant 0 : i32
    return %arg0, %c0_i32 : i32, i32
  }
  func.func @transform_4(%arg0: i32) -> (i32, i32) {
    %c0_i32 = arith.constant 0 : i32
    %c0_i32_0 = arith.constant 0 : i32
    return %arg0, %c0_i32 : i32, i32
  }
}

module attributes {stable_mosaic.version = 11 : i64} {
  func.func @_epilogue_kernel(%arg0: i32, %arg1: memref<16x256xf32, #tpu.memory_space<vmem>>, %arg2: memref<16x4xf32, #tpu.memory_space<vmem>>, %arg3: memref<4x256xf32, #tpu.memory_space<vmem>>, %arg4: memref<9x16x16xf32, #tpu.memory_space<vmem>>, %arg5: memref<16x16xf32, #tpu.memory_space<vmem>>, %arg6: memref<16x1xf32, #tpu.memory_space<vmem>>, %arg7: memref<9x256xf32, #tpu.memory_space<vmem>>, %arg8: memref<16x256xf32, #tpu.memory_space<vmem>>) attributes {dimension_semantics = [#tpu.dimension_semantics<parallel>], iteration_bounds = array<i64: 1>, scalar_prefetch = 0 : i64, scratch_operands = 0 : i64, tpu.core_type = #tpu.core_type<tc>, window_params = [{transform_indices = @transform_0, window_bounds = array<i64: 16, 256>}, {transform_indices = @transform_1, window_bounds = array<i64: 16, 4>}, {pipeline_mode = #tpu.pipeline_mode<synchronous>, transform_indices = @transform_2, window_bounds = array<i64: 4, 256>}, {pipeline_mode = #tpu.pipeline_mode<synchronous>, transform_indices = @transform_3, window_bounds = array<i64: 9, 16, 16>}, {pipeline_mode = #tpu.pipeline_mode<synchronous>, transform_indices = @transform_4, window_bounds = array<i64: 16, 16>}, {pipeline_mode = #tpu.pipeline_mode<synchronous>, transform_indices = @transform_5, window_bounds = array<i64: 16, 1>}, {pipeline_mode = #tpu.pipeline_mode<synchronous>, transform_indices = @transform_6, window_bounds = array<i64: 9, 256>}, {transform_indices = @transform_7, window_bounds = array<i64: 16, 256>}]} {
    %c0 = arith.constant 0 : index
    %c0_0 = arith.constant 0 : index
    %0 = vector.load %arg1[%c0, %c0_0] : memref<16x256xf32, #tpu.memory_space<vmem>>, vector<16x256xf32>
    %c0_1 = arith.constant 0 : index
    %c0_2 = arith.constant 0 : index
    %1 = vector.load %arg2[%c0_1, %c0_2] : memref<16x4xf32, #tpu.memory_space<vmem>>, vector<16x4xf32>
    %c0_3 = arith.constant 0 : index
    %c0_4 = arith.constant 0 : index
    %2 = vector.load %arg3[%c0_3, %c0_4] : memref<4x256xf32, #tpu.memory_space<vmem>>, vector<4x256xf32>
    %cst = arith.constant dense<0.000000e+00> : vector<16x256xf32>
    %3 = tpu.matmul %1, %2, %cst {dimension_numbers = #tpu.dot_dimension_numbers<[1], [0], [0], [1], [0, 0, 1, 1], [], []>} : vector<16x4xf32>, vector<4x256xf32>, vector<16x256xf32> -> vector<16x256xf32>
    %4 = arith.mulf %0, %3 : vector<16x256xf32>
    %c0_5 = arith.constant 0 : index
    %c0_6 = arith.constant 0 : index
    %5 = vector.load %arg5[%c0_5, %c0_6] : memref<16x16xf32, #tpu.memory_space<vmem>>, vector<16x16xf32>
    %cst_7 = arith.constant dense<0.000000e+00> : vector<16x256xf32>
    %6 = tpu.matmul %5, %0, %cst_7 {dimension_numbers = #tpu.dot_dimension_numbers<[1], [0], [0], [1], [0, 0, 1, 1], [], []>} : vector<16x16xf32>, vector<16x256xf32>, vector<16x256xf32> -> vector<16x256xf32>
    %7 = arith.negf %6 : vector<16x256xf32>
    %8 = math.exp %7 : vector<16x256xf32>
    %cst_8 = arith.constant 1.000000e+00 : f32
    %9 = vector.broadcast %cst_8 : f32 to vector<16x256xf32>
    %10 = arith.addf %9, %8 : vector<16x256xf32>
    %11 = arith.divf %9, %10 : vector<16x256xf32>
    %c0_9 = arith.constant 0 : index
    %c0_10 = arith.constant 0 : index
    %12 = vector.load %arg7[%c0_9, %c0_10] : memref<9x256xf32, #tpu.memory_space<vmem>>, vector<9x256xf32>
    %c4 = arith.constant 4 : index
    %c0_11 = arith.constant 0 : index
    %c0_12 = arith.constant 0 : index
    %13 = vector.load %arg4[%c4, %c0_11, %c0_12] : memref<9x16x16xf32, #tpu.memory_space<vmem>>, vector<1x16x16xf32>
    %14 = vector.shape_cast %13 : vector<1x16x16xf32> to vector<16x16xf32>
    %cst_13 = arith.constant dense<0.000000e+00> : vector<16x256xf32>
    %15 = tpu.matmul %14, %4, %cst_13 {dimension_numbers = #tpu.dot_dimension_numbers<[1], [0], [0], [1], [0, 0, 1, 1], [], []>} : vector<16x16xf32>, vector<16x256xf32>, vector<16x256xf32> -> vector<16x256xf32>
    %c17_i32 = arith.constant 17 : i32
    %16 = tpu.dynamic_rotate %4 by %c17_i32 dim 1 : vector<16x256xf32>, i32 -> vector<16x256xf32>
    %17 = vector.extract_strided_slice %12 {offsets = [0, 0], sizes = [1, 256], strides = [1, 1]} : vector<9x256xf32> to vector<1x256xf32>
    %18 = vector.broadcast %17 : vector<1x256xf32> to vector<16x256xf32>
    %19 = arith.mulf %16, %18 : vector<16x256xf32>
    %c0_14 = arith.constant 0 : index
    %c0_15 = arith.constant 0 : index
    %c0_16 = arith.constant 0 : index
    %20 = vector.load %arg4[%c0_14, %c0_15, %c0_16] : memref<9x16x16xf32, #tpu.memory_space<vmem>>, vector<1x16x16xf32>
    %21 = vector.shape_cast %20 : vector<1x16x16xf32> to vector<16x16xf32>
    %cst_17 = arith.constant dense<0.000000e+00> : vector<16x256xf32>
    %22 = tpu.matmul %21, %19, %cst_17 {dimension_numbers = #tpu.dot_dimension_numbers<[1], [0], [0], [1], [0, 0, 1, 1], [], []>} : vector<16x16xf32>, vector<16x256xf32>, vector<16x256xf32> -> vector<16x256xf32>
    %23 = arith.addf %15, %22 : vector<16x256xf32>
    %c16_i32 = arith.constant 16 : i32
    %24 = tpu.dynamic_rotate %4 by %c16_i32 dim 1 : vector<16x256xf32>, i32 -> vector<16x256xf32>
    %25 = vector.extract_strided_slice %12 {offsets = [1, 0], sizes = [1, 256], strides = [1, 1]} : vector<9x256xf32> to vector<1x256xf32>
    %26 = vector.broadcast %25 : vector<1x256xf32> to vector<16x256xf32>
    %27 = arith.mulf %24, %26 : vector<16x256xf32>
    %c1 = arith.constant 1 : index
    %c0_18 = arith.constant 0 : index
    %c0_19 = arith.constant 0 : index
    %28 = vector.load %arg4[%c1, %c0_18, %c0_19] : memref<9x16x16xf32, #tpu.memory_space<vmem>>, vector<1x16x16xf32>
    %29 = vector.shape_cast %28 : vector<1x16x16xf32> to vector<16x16xf32>
    %cst_20 = arith.constant dense<0.000000e+00> : vector<16x256xf32>
    %30 = tpu.matmul %29, %27, %cst_20 {dimension_numbers = #tpu.dot_dimension_numbers<[1], [0], [0], [1], [0, 0, 1, 1], [], []>} : vector<16x16xf32>, vector<16x256xf32>, vector<16x256xf32> -> vector<16x256xf32>
    %31 = arith.addf %23, %30 : vector<16x256xf32>
    %c15_i32 = arith.constant 15 : i32
    %32 = tpu.dynamic_rotate %4 by %c15_i32 dim 1 : vector<16x256xf32>, i32 -> vector<16x256xf32>
    %33 = vector.extract_strided_slice %12 {offsets = [2, 0], sizes = [1, 256], strides = [1, 1]} : vector<9x256xf32> to vector<1x256xf32>
    %34 = vector.broadcast %33 : vector<1x256xf32> to vector<16x256xf32>
    %35 = arith.mulf %32, %34 : vector<16x256xf32>
    %c2 = arith.constant 2 : index
    %c0_21 = arith.constant 0 : index
    %c0_22 = arith.constant 0 : index
    %36 = vector.load %arg4[%c2, %c0_21, %c0_22] : memref<9x16x16xf32, #tpu.memory_space<vmem>>, vector<1x16x16xf32>
    %37 = vector.shape_cast %36 : vector<1x16x16xf32> to vector<16x16xf32>
    %cst_23 = arith.constant dense<0.000000e+00> : vector<16x256xf32>
    %38 = tpu.matmul %37, %35, %cst_23 {dimension_numbers = #tpu.dot_dimension_numbers<[1], [0], [0], [1], [0, 0, 1, 1], [], []>} : vector<16x16xf32>, vector<16x256xf32>, vector<16x256xf32> -> vector<16x256xf32>
    %39 = arith.addf %31, %38 : vector<16x256xf32>
    %c1_i32 = arith.constant 1 : i32
    %40 = tpu.dynamic_rotate %4 by %c1_i32 dim 1 : vector<16x256xf32>, i32 -> vector<16x256xf32>
    %41 = vector.extract_strided_slice %12 {offsets = [3, 0], sizes = [1, 256], strides = [1, 1]} : vector<9x256xf32> to vector<1x256xf32>
    %42 = vector.broadcast %41 : vector<1x256xf32> to vector<16x256xf32>
    %43 = arith.mulf %40, %42 : vector<16x256xf32>
    %c3 = arith.constant 3 : index
    %c0_24 = arith.constant 0 : index
    %c0_25 = arith.constant 0 : index
    %44 = vector.load %arg4[%c3, %c0_24, %c0_25] : memref<9x16x16xf32, #tpu.memory_space<vmem>>, vector<1x16x16xf32>
    %45 = vector.shape_cast %44 : vector<1x16x16xf32> to vector<16x16xf32>
    %cst_26 = arith.constant dense<0.000000e+00> : vector<16x256xf32>
    %46 = tpu.matmul %45, %43, %cst_26 {dimension_numbers = #tpu.dot_dimension_numbers<[1], [0], [0], [1], [0, 0, 1, 1], [], []>} : vector<16x16xf32>, vector<16x256xf32>, vector<16x256xf32> -> vector<16x256xf32>
    %47 = arith.addf %39, %46 : vector<16x256xf32>
    %c255_i32 = arith.constant 255 : i32
    %48 = tpu.dynamic_rotate %4 by %c255_i32 dim 1 : vector<16x256xf32>, i32 -> vector<16x256xf32>
    %49 = vector.extract_strided_slice %12 {offsets = [5, 0], sizes = [1, 256], strides = [1, 1]} : vector<9x256xf32> to vector<1x256xf32>
    %50 = vector.broadcast %49 : vector<1x256xf32> to vector<16x256xf32>
    %51 = arith.mulf %48, %50 : vector<16x256xf32>
    %c5 = arith.constant 5 : index
    %c0_27 = arith.constant 0 : index
    %c0_28 = arith.constant 0 : index
    %52 = vector.load %arg4[%c5, %c0_27, %c0_28] : memref<9x16x16xf32, #tpu.memory_space<vmem>>, vector<1x16x16xf32>
    %53 = vector.shape_cast %52 : vector<1x16x16xf32> to vector<16x16xf32>
    %cst_29 = arith.constant dense<0.000000e+00> : vector<16x256xf32>
    %54 = tpu.matmul %53, %51, %cst_29 {dimension_numbers = #tpu.dot_dimension_numbers<[1], [0], [0], [1], [0, 0, 1, 1], [], []>} : vector<16x16xf32>, vector<16x256xf32>, vector<16x256xf32> -> vector<16x256xf32>
    %55 = arith.addf %47, %54 : vector<16x256xf32>
    %c241_i32 = arith.constant 241 : i32
    %56 = tpu.dynamic_rotate %4 by %c241_i32 dim 1 : vector<16x256xf32>, i32 -> vector<16x256xf32>
    %57 = vector.extract_strided_slice %12 {offsets = [6, 0], sizes = [1, 256], strides = [1, 1]} : vector<9x256xf32> to vector<1x256xf32>
    %58 = vector.broadcast %57 : vector<1x256xf32> to vector<16x256xf32>
    %59 = arith.mulf %56, %58 : vector<16x256xf32>
    %c6 = arith.constant 6 : index
    %c0_30 = arith.constant 0 : index
    %c0_31 = arith.constant 0 : index
    %60 = vector.load %arg4[%c6, %c0_30, %c0_31] : memref<9x16x16xf32, #tpu.memory_space<vmem>>, vector<1x16x16xf32>
    %61 = vector.shape_cast %60 : vector<1x16x16xf32> to vector<16x16xf32>
    %cst_32 = arith.constant dense<0.000000e+00> : vector<16x256xf32>
    %62 = tpu.matmul %61, %59, %cst_32 {dimension_numbers = #tpu.dot_dimension_numbers<[1], [0], [0], [1], [0, 0, 1, 1], [], []>} : vector<16x16xf32>, vector<16x256xf32>, vector<16x256xf32> -> vector<16x256xf32>
    %63 = arith.addf %55, %62 : vector<16x256xf32>
    %c240_i32 = arith.constant 240 : i32
    %64 = tpu.dynamic_rotate %4 by %c240_i32 dim 1 : vector<16x256xf32>, i32 -> vector<16x256xf32>
    %65 = vector.extract_strided_slice %12 {offsets = [7, 0], sizes = [1, 256], strides = [1, 1]} : vector<9x256xf32> to vector<1x256xf32>
    %66 = vector.broadcast %65 : vector<1x256xf32> to vector<16x256xf32>
    %67 = arith.mulf %64, %66 : vector<16x256xf32>
    %c7 = arith.constant 7 : index
    %c0_33 = arith.constant 0 : index
    %c0_34 = arith.constant 0 : index
    %68 = vector.load %arg4[%c7, %c0_33, %c0_34] : memref<9x16x16xf32, #tpu.memory_space<vmem>>, vector<1x16x16xf32>
    %69 = vector.shape_cast %68 : vector<1x16x16xf32> to vector<16x16xf32>
    %cst_35 = arith.constant dense<0.000000e+00> : vector<16x256xf32>
    %70 = tpu.matmul %69, %67, %cst_35 {dimension_numbers = #tpu.dot_dimension_numbers<[1], [0], [0], [1], [0, 0, 1, 1], [], []>} : vector<16x16xf32>, vector<16x256xf32>, vector<16x256xf32> -> vector<16x256xf32>
    %71 = arith.addf %63, %70 : vector<16x256xf32>
    %c239_i32 = arith.constant 239 : i32
    %72 = tpu.dynamic_rotate %4 by %c239_i32 dim 1 : vector<16x256xf32>, i32 -> vector<16x256xf32>
    %73 = vector.extract_strided_slice %12 {offsets = [8, 0], sizes = [1, 256], strides = [1, 1]} : vector<9x256xf32> to vector<1x256xf32>
    %74 = vector.broadcast %73 : vector<1x256xf32> to vector<16x256xf32>
    %75 = arith.mulf %72, %74 : vector<16x256xf32>
    %c8 = arith.constant 8 : index
    %c0_36 = arith.constant 0 : index
    %c0_37 = arith.constant 0 : index
    %76 = vector.load %arg4[%c8, %c0_36, %c0_37] : memref<9x16x16xf32, #tpu.memory_space<vmem>>, vector<1x16x16xf32>
    %77 = vector.shape_cast %76 : vector<1x16x16xf32> to vector<16x16xf32>
    %cst_38 = arith.constant dense<0.000000e+00> : vector<16x256xf32>
    %78 = tpu.matmul %77, %75, %cst_38 {dimension_numbers = #tpu.dot_dimension_numbers<[1], [0], [0], [1], [0, 0, 1, 1], [], []>} : vector<16x16xf32>, vector<16x256xf32>, vector<16x256xf32> -> vector<16x256xf32>
    %79 = arith.addf %71, %78 : vector<16x256xf32>
    %80 = arith.mulf %4, %11 : vector<16x256xf32>
    %81 = arith.addf %80, %79 : vector<16x256xf32>
    %c0_39 = arith.constant 0 : index
    %c0_40 = arith.constant 0 : index
    %82 = vector.load %arg6[%c0_39, %c0_40] : memref<16x1xf32, #tpu.memory_space<vmem>>, vector<16x1xf32>
    %83 = vector.broadcast %82 : vector<16x1xf32> to vector<16x256xf32>
    %84 = arith.addf %81, %83 : vector<16x256xf32>
    %c0_41 = arith.constant 0 : index
    %c0_42 = arith.constant 0 : index
    %85 = vector.load %arg8[%c0_41, %c0_42] : memref<16x256xf32, #tpu.memory_space<vmem>>, vector<16x256xf32>
    tpu.vector_store %arg8[%c0_41, %c0_42], %84 {strides = array<i32>} : memref<16x256xf32, #tpu.memory_space<vmem>>, vector<16x256xf32>,
    return
  }
  func.func @transform_0(%arg0: i32) -> (i32, i32) {
    %c0_i32 = arith.constant 0 : i32
    %c0_i32_0 = arith.constant 0 : i32
    return %arg0, %c0_i32 : i32, i32
  }
  func.func @transform_1(%arg0: i32) -> (i32, i32) {
    %c0_i32 = arith.constant 0 : i32
    %c0_i32_0 = arith.constant 0 : i32
    return %arg0, %c0_i32 : i32, i32
  }
  func.func @transform_2(%arg0: i32) -> (i32, i32) {
    %c0_i32 = arith.constant 0 : i32
    %c0_i32_0 = arith.constant 0 : i32
    %c0_i32_1 = arith.constant 0 : i32
    return %c0_i32, %c0_i32_0 : i32, i32
  }
  func.func @transform_3(%arg0: i32) -> (i32, i32, i32) {
    %c0_i32 = arith.constant 0 : i32
    %c0_i32_0 = arith.constant 0 : i32
    %c0_i32_1 = arith.constant 0 : i32
    %c0_i32_2 = arith.constant 0 : i32
    return %c0_i32, %c0_i32_0, %c0_i32_1 : i32, i32, i32
  }
  func.func @transform_4(%arg0: i32) -> (i32, i32) {
    %c0_i32 = arith.constant 0 : i32
    %c0_i32_0 = arith.constant 0 : i32
    %c0_i32_1 = arith.constant 0 : i32
    return %c0_i32, %c0_i32_0 : i32, i32
  }
  func.func @transform_5(%arg0: i32) -> (i32, i32) {
    %c0_i32 = arith.constant 0 : i32
    %c0_i32_0 = arith.constant 0 : i32
    %c0_i32_1 = arith.constant 0 : i32
    return %c0_i32, %c0_i32_0 : i32, i32
  }
  func.func @transform_6(%arg0: i32) -> (i32, i32) {
    %c0_i32 = arith.constant 0 : i32
    %c0_i32_0 = arith.constant 0 : i32
    %c0_i32_1 = arith.constant 0 : i32
    return %c0_i32, %c0_i32_0 : i32, i32
  }
  func.func @transform_7(%arg0: i32) -> (i32, i32) {
    %c0_i32 = arith.constant 0 : i32
    %c0_i32_0 = arith.constant 0 : i32
    return %arg0, %c0_i32 : i32, i32
  }
}

</mosaic_0001>

<bundles_post_ra>
// kernel: tile.13
= control target key start
LH: loop header
LB: loop body
LE: loop exit
PB: predicated region body
PF: predicated region fallthrough
CT: control target
= control target key end

     0   :  { %s22_s0 = inlined_call_operand.vmem [shape: f32[16], index: 0, kind: input, shape index: {}]   ;;  %s23_s1 = inlined_call_operand.vmem [shape: f32[4,16], index: 1, kind: output, shape index: {}]  }
   0x1   :  { %v4_v0 = vld [vmem:[%s22_s0] ss:$0 sm:$0xff] }
   0x2   :  { %5 = vst [vmem:[%s23_s1] sm:$0xf] %v4_v0 }

// kernel: tile.0
= control target key start
LH: loop header
LB: loop body
LE: loop exit
PB: predicated region body
PF: predicated region fallthrough
CT: control target
= control target key end

     0   :  { %s176_s8 = smov 125   ;;  %s177_s9 = smov 126   ;;  %vm7_vm0 = vcmask 7168   ;;  %s331_s0 = inlined_call_operand.vmem [shape: f32[4,16], index: 0, kind: input, shape index: {}]   ;;  %s332_s1 = inlined_call_operand.vmem [shape: f32[64,1], index: 1, kind: output, shape index: {}]  }
   0x1   :  { %v4_v0 = vld [vmem:[%s331_s0] sm:$0xf]  ;;  %s175_s0 = smov 127   ;;  %s178_s10 = smov 124  }
   0x2   :  { %5 = vst [vmem:[#allocation0] sm:$0xf] %v4_v0  ;;  %s179_s11 = smov 123   ;;  %s180_s12 = smov 122  }
   0x3   :  { %s181_s13 = smov 121   ;;  %s182_s14 = smov 120  }
   0x4   :  { %s183_s19 = smov 119   ;;  %s184_s20 = smov 118  }
   0x5   :  { %s185_s21 = smov 117   ;;  %s186_s22 = smov 116  }
   0x6   :  { %s187_s23 = smov 115   ;;  %s188_s24 = smov 114  }
   0x7   :  { %s189_s25 = smov 113  }
   0x9   :  { %v10_v1 = vld [vmem:[#allocation0] sm:$0xf]  }
   0xa   :  { %v26_v2 = vld [vmem:[#allocation0] sm:$0xf]   ;;  %11 = vrot.lane.b32.xlu0 %v10_v1, %s175_s0 }
   0xb   :  { %27 = vrot.lane.b32.xlu1 %v26_v2, %s176_s8  ;;  %v18_v3 = vld [vmem:[#allocation0] sm:$0xf]  }
   0xc   :  { %v34_v4 = vld [vmem:[#allocation0] sm:$0xf]  }
   0xd   :  { %v42_v5 = vld [vmem:[#allocation0] sm:$0xf]  }
   0xe   :  { %19 = vrot.lane.b32.xlu0 %v18_v3, %s177_s9  ;;  %v50_v6 = vld [vmem:[#allocation0] sm:$0xf]  }
   0xf   :  { %35 = vrot.lane.b32.xlu1 %v34_v4, %s178_s10  ;;  %v58_v7 = vld [vmem:[#allocation0] sm:$0xf]  }
  0x10   :  { %v66_v8 = vld [vmem:[#allocation0] sm:$0xf]  }
  0x11   :  { %v74_v9 = vld [vmem:[#allocation0] sm:$0xf]  }
  0x12   :  { %43 = vrot.lane.b32.xlu0 %v42_v5, %s179_s11  ;;  %v82_v10 = vld [vmem:[#allocation0] sm:$0xf]  }
  0x13   :  { %51 = vrot.lane.b32.xlu1 %v50_v6, %s180_s12  ;;  %v6_v11 = vld [vmem:[#allocation0] sm:$0xf]  }
  0x14   :  { %8 = vst.msk [vmem:[%s332_s1] ss:$16 sm:$0x3] %vm7_vm0, %v6_v11   ;;  %9 = vst.msk [vmem:[%s332_s1] ss:$16 sm:$0xc] %vm7_vm0, %v6_v11  }
  0x15   :  { %v90_v12 = vld [vmem:[#allocation0] sm:$0xf]  }
  0x16   :  { %59 = vrot.lane.b32.xlu0 %v58_v7, %s181_s13  ;;  %v98_v13 = vld [vmem:[#allocation0] sm:$0xf]  }
  0x17   :  { %67 = vrot.lane.b32.xlu1 %v66_v8, %s182_s14  ;;  %v106_v14 = vld [vmem:[#allocation0] sm:$0xf]  }
  0x18   :  { %v114_v15 = vld [vmem:[#allocation0] sm:$0xf]  }
  0x19   :  { %v122_v16 = vld [vmem:[#allocation0] sm:$0xf]  }
  0x1a   :  { %75 = vrot.lane.b32.xlu0 %v74_v9, %s183_s19 }
  0x1b   :  { %83 = vrot.lane.b32.xlu1 %v82_v10, %s184_s20 }
  0x1e   :  { %91 = vrot.lane.b32.xlu0 %v90_v12, %s185_s21 }
  0x1f   :  { %99 = vrot.lane.b32.xlu1 %v98_v13, %s186_s22 }
  0x22   :  { %107 = vrot.lane.b32.xlu0 %v106_v14, %s187_s23 }
  0x23   :  { %115 = vrot.lane.b32.xlu1 %v114_v15, %s188_s24 }
  0x26   :  { %123 = vrot.lane.b32.xlu0 %v122_v16, %s189_s25 }
  0x7c   :  { %v12_v17 = vpop.permute.xlu0 %11  }
  0x7d   :  { %v28_v18 = vpop.permute.xlu1 %27   ;;  %130 = vst.msk [vmem:[%s332_s1 + $0x1] ss:$16 sm:$0x3] %vm7_vm0, %v12_v17   ;;  %131 = vst.msk [vmem:[%s332_s1 + $0x1] ss:$16 sm:$0xc] %vm7_vm0, %v12_v17  }
  0x7e   :  { %134 = vst.msk [vmem:[%s332_s1 + $0x3] ss:$16 sm:$0x3] %vm7_vm0, %v28_v18   ;;  %135 = vst.msk [vmem:[%s332_s1 + $0x3] ss:$16 sm:$0xc] %vm7_vm0, %v28_v18  }
  0x80   :  { %v20_v19 = vpop.permute.xlu0 %19  }
  0x81   :  { %v36_v20 = vpop.permute.xlu1 %35   ;;  %132 = vst.msk [vmem:[%s332_s1 + $0x2] ss:$16 sm:$0x3] %vm7_vm0, %v20_v19   ;;  %133 = vst.msk [vmem:[%s332_s1 + $0x2] ss:$16 sm:$0xc] %vm7_vm0, %v20_v19  }
  0x82   :  { %136 = vst.msk [vmem:[%s332_s1 + $0x4] ss:$16 sm:$0x3] %vm7_vm0, %v36_v20   ;;  %137 = vst.msk [vmem:[%s332_s1 + $0x4] ss:$16 sm:$0xc] %vm7_vm0, %v36_v20  }
  0x84   :  { %v44_v21 = vpop.permute.xlu0 %43  }
  0x85   :  { %v52_v22 = vpop.permute.xlu1 %51   ;;  %138 = vst.msk [vmem:[%s332_s1 + $0x5] ss:$16 sm:$0x3] %vm7_vm0, %v44_v21   ;;  %139 = vst.msk [vmem:[%s332_s1 + $0x5] ss:$16 sm:$0xc] %vm7_vm0, %v44_v21  }
  0x86   :  { %140 = vst.msk [vmem:[%s332_s1 + $0x6] ss:$16 sm:$0x3] %vm7_vm0, %v52_v22   ;;  %141 = vst.msk [vmem:[%s332_s1 + $0x6] ss:$16 sm:$0xc] %vm7_vm0, %v52_v22  }
  0x88   :  { %v60_v23 = vpop.permute.xlu0 %59  }
  0x89   :  { %v68_v24 = vpop.permute.xlu1 %67   ;;  %142 = vst.msk [vmem:[%s332_s1 + $0x7] ss:$16 sm:$0x3] %vm7_vm0, %v60_v23   ;;  %143 = vst.msk [vmem:[%s332_s1 + $0x7] ss:$16 sm:$0xc] %vm7_vm0, %v60_v23  }
  0x8a   :  { %144 = vst.msk [vmem:[%s332_s1 + $0x8] ss:$16 sm:$0x3] %vm7_vm0, %v68_v24   ;;  %145 = vst.msk [vmem:[%s332_s1 + $0x8] ss:$16 sm:$0xc] %vm7_vm0, %v68_v24  }
  0x8c   :  { %v76_v25 = vpop.permute.xlu0 %75  }
  0x8d   :  { %v84_v26 = vpop.permute.xlu1 %83   ;;  %146 = vst.msk [vmem:[%s332_s1 + $0x9] ss:$16 sm:$0x3] %vm7_vm0, %v76_v25   ;;  %147 = vst.msk [vmem:[%s332_s1 + $0x9] ss:$16 sm:$0xc] %vm7_vm0, %v76_v25  }
  0x8e   :  { %148 = vst.msk [vmem:[%s332_s1 + $0xa] ss:$16 sm:$0x3] %vm7_vm0, %v84_v26   ;;  %149 = vst.msk [vmem:[%s332_s1 + $0xa] ss:$16 sm:$0xc] %vm7_vm0, %v84_v26  }
  0x90   :  { %v92_v27 = vpop.permute.xlu0 %91  }
  0x91   :  { %v100_v28 = vpop.permute.xlu1 %99   ;;  %150 = vst.msk [vmem:[%s332_s1 + $0xb] ss:$16 sm:$0x3] %vm7_vm0, %v92_v27   ;;  %151 = vst.msk [vmem:[%s332_s1 + $0xb] ss:$16 sm:$0xc] %vm7_vm0, %v92_v27  }
  0x92   :  { %152 = vst.msk [vmem:[%s332_s1 + $0xc] ss:$16 sm:$0x3] %vm7_vm0, %v100_v28   ;;  %153 = vst.msk [vmem:[%s332_s1 + $0xc] ss:$16 sm:$0xc] %vm7_vm0, %v100_v28  }
  0x94   :  { %v108_v29 = vpop.permute.xlu0 %107  }
  0x95   :  { %v116_v30 = vpop.permute.xlu1 %115   ;;  %154 = vst.msk [vmem:[%s332_s1 + $0xd] ss:$16 sm:$0x3] %vm7_vm0, %v108_v29   ;;  %155 = vst.msk [vmem:[%s332_s1 + $0xd] ss:$16 sm:$0xc] %vm7_vm0, %v108_v29  }
  0x96   :  { %156 = vst.msk [vmem:[%s332_s1 + $0xe] ss:$16 sm:$0x3] %vm7_vm0, %v116_v30   ;;  %157 = vst.msk [vmem:[%s332_s1 + $0xe] ss:$16 sm:$0xc] %vm7_vm0, %v116_v30  }
  0x98   :  { %v124_v31 = vpop.permute.xlu0 %123  }
  0x99   :  { %158 = vst.msk [vmem:[%s332_s1 + $0xf] ss:$16 sm:$0x3] %vm7_vm0, %v124_v31   ;;  %159 = vst.msk [vmem:[%s332_s1 + $0xf] ss:$16 sm:$0xc] %vm7_vm0, %v124_v31  }

// kernel: sub.5
= control target key start
LH: loop header
LB: loop body
LE: loop exit
PB: predicated region body
PF: predicated region fallthrough
CT: control target
= control target key end

     0   :  { %s37_s8 = smov 80   ;;  %vm7_vm0 = vcmask 130048   ;;  %s38_s9 = smov 96   ;;  %s55_s0 = inlined_call_operand.vmem [shape: f32[64], index: 0, kind: input, shape index: {}]   ;;  %s56_s1 = inlined_call_operand.vmem [shape: f32[4,16], index: 1, kind: output, shape index: {}]  }
   0x1   :  { %v4_v0 = vld [vmem:[%s55_s0] sm:$0x1]  ;;  %s36_s0 = smov 112  }
   0x2   :  { %5 = vst [vmem:[#allocation1] sm:$0x1] %v4_v0 }
   0x9   :  { %v9_v1 = vld [vmem:[#allocation1] sm:$0x1]  }
   0xa   :  { %v21_v2 = vld [vmem:[#allocation1] sm:$0x1]   ;;  %10 = vrot.lane.b32.xlu0 %v9_v1, %s36_s0 }
   0xb   :  { %22 = vrot.lane.b32.xlu1 %v21_v2, %s37_s8  ;;  %v6_v3 = vld [vmem:[#allocation1] sm:$0x1]  }
   0xc   :  { %v15_v4 = vld [vmem:[#allocation1] sm:$0x1]   ;;  %8 = vst.msk [vmem:[#allocation0] sm:$0x1] %vm7_vm0, %v6_v3  }
   0xe   :  { %16 = vrot.lane.b32.xlu0 %v15_v4, %s38_s9 }
  0x7c   :  { %v11_v5 = vpop.permute.xlu0 %10  }
  0x7d   :  { %v23_v6 = vpop.permute.xlu1 %22   ;;  %14 = vst.msk [vmem:[#allocation0 + $0x1] sm:$0x1] %vm7_vm0, %v11_v5  }
  0x7e   :  { %26 = vst.msk [vmem:[#allocation0 + $0x3] sm:$0x1] %vm7_vm0, %v23_v6  }
  0x80   :  { %v17_v7 = vpop.permute.xlu0 %16  }
  0x81   :  { %20 = vst.msk [vmem:[#allocation0 + $0x2] sm:$0x1] %vm7_vm0, %v17_v7  }
  0x88   :  { %v30_v8 = vld [vmem:[#allocation0] sm:$0xf] }
  0x89   :  { %32 = vst [vmem:[%s56_s1] sm:$0xf] %v30_v8 }

// kernel: attention_propagation_forward.2
= control target key start
LH: loop header
LB: loop body
LE: loop exit
PB: predicated region body
PF: predicated region fallthrough
CT: control target
= control target key end

     0   :  { %v289_v3 = vmov 0.0   ;;  %v290_v6 = vmov 0   ;;  %vm76_vm0 = vcmask 130048   ;;  %vm254_vm1 = vcmask 7168   ;;  %s464_s0 = inlined_call_operand.vmem [shape: f32[16,256], index: 0, kind: input, shape index: {}]   ;;  %s465_s1 = inlined_call_operand.vmem [shape: f32[64,16], index: 1, kind: input, shape index: {}]   ;;  %s466_s2 = inlined_call_operand.vmem [shape: f32[64,1], index: 2, kind: input, shape index: {}]   ;;  %s467_s3 = inlined_call_operand.vmem [shape: f32[64,256], index: 3, kind: output, shape index: {0}]   ;;  %s468_s4 = inlined_call_operand.vmem [shape: f32[64,1], index: 4, kind: output, shape index: {1}]  }
   0x1   :  { %v25_v0 = vld [vmem:[%s464_s0 + $0x8] sm:$0xff]  ;;  %v27_v1 = vld [vmem:[%s464_s0 + $0x18] sm:$0xff]  ;;  %v24_v2 = vld [vmem:[%s464_s0] sm:$0xff]  ;;  %165 = vmatprep.mubr.f32.mxu0 %v289_v3  ;;  %189 = vmatprep.mubr.f32.mxu1 %v289_v3 }
   0x2   :  { %v279_v4 = vpack.c.bf16 %v27_v1, %v25_v0  ;;  %v26_v5 = vld [vmem:[%s464_s0 + $0x10] sm:$0xff]  ;;  %288 = vset.pattern.permute.xlu1 %v290_v6  ;;  %287 = vset.pattern.permute.xlu0 %v290_v6  ;;  %v16_v8 = vld [vmem:[%s465_s1] sm:$0xff]  ;;  %v31_v12 = vld [vmem:[%s466_s2 + $0x18] sm:$0xff] }
   0x3   :  { %v281_v7 = vpack.c.bf16 %v26_v5, %v24_v2  ;;  %v20_v9 = vld [vmem:[%s465_s1 + $0x20] sm:$0xff]  ;;  %v30_v10 = vld [vmem:[%s466_s2 + $0x10] sm:$0xff]  ;;  %v29_v13 = vld [vmem:[%s466_s2 + $0x8] sm:$0xff] }
   0x4   :  { %280 = vmatprep.subr.bf16.mxu0 %v279_v4  ;;  %283 = vmatprep.subr.bf16.mxu1 %v279_v4  ;;  %v28_v11 = vld [vmem:[%s466_s2] sm:$0xff]  ;;  %v17_v14 = vld [vmem:[%s465_s1 + $0x8] sm:$0xff]  ;;  %v18_v18 = vld [vmem:[%s465_s1 + $0x10] sm:$0xff] }
   0x5   :  { %282 = vmatpush1.bf16.msra.mxu0 %v281_v7  ;;  %284 = vmatpush1.bf16.msra.mxu1 %v281_v7  ;;  %v21_v15 = vld [vmem:[%s465_s1 + $0x28] sm:$0xff]  ;;  %v32_v17 = vld [vmem:[%s466_s2 + $0x20] sm:$0xff]  ;;  %v22_v19 = vld [vmem:[%s465_s1 + $0x30] sm:$0xff] }
   0x6   :  { %48 = vperm.xlu1 %288, %v30_v10   ;;  %38 = vperm.xlu0 %287, %v28_v11   ;;  %v33_v16 = vld [vmem:[%s466_s2 + $0x28] sm:$0xff]  ;;  %v35_v20 = vld [vmem:[%s466_s2 + $0x38] sm:$0xff]  ;;  %v34_v21 = vld [vmem:[%s466_s2 + $0x30] sm:$0xff] }
   0x7   :  { %v19_v22 = vld [vmem:[%s465_s1 + $0x18] sm:$0xff] }
   0x8   :  { %271 = vmatmul.mubr.msk.f32.vlgmr.msra.gmra.mrb[0].mxu0 %vm76_vm0, %v16_v8  ;;  %275 = vmatmul.mubr.msk.f32.vlgmr.msra.gmra.mrb[0].mxu1 %vm76_vm0, %v20_v9  ;;  %v23_v23 = vld [vmem:[%s465_s1 + $0x38] sm:$0xff] }
   0x9   :  { %171 = vmatprep.mubr.f32.mxu0 %v289_v3  ;;  %195 = vmatprep.mubr.f32.mxu1 %v289_v3 }
   0xa   :  { %53 = vperm.xlu1 %288, %v31_v12   ;;  %43 = vperm.xlu0 %287, %v29_v13  }
   0xc   :  { %272 = vmatmul.mubr.msk.f32.gmra.mrb[2].mxu0 %vm76_vm0, %v17_v14  ;;  %276 = vmatmul.mubr.msk.f32.gmra.mrb[2].mxu1 %vm76_vm0, %v21_v15 }
   0xd   :  { %177 = vmatprep.mubr.f32.mxu0 %v289_v3  ;;  %201 = vmatprep.mubr.f32.mxu1 %v289_v3 }
   0xe   :  { %63 = vperm.xlu1 %288, %v33_v16   ;;  %58 = vperm.xlu0 %287, %v32_v17  }
  0x10   :  { %273 = vmatmul.mubr.msk.f32.gmra.mrb[4].mxu0 %vm76_vm0, %v18_v18  ;;  %277 = vmatmul.mubr.msk.f32.gmra.mrb[4].mxu1 %vm76_vm0, %v22_v19 }
  0x11   :  { %183 = vmatprep.mubr.f32.mxu0 %v289_v3  ;;  %207 = vmatprep.mubr.f32.mxu1 %v289_v3 }
  0x12   :  { %73 = vperm.xlu1 %288, %v35_v20   ;;  %68 = vperm.xlu0 %287, %v34_v21  }
  0x14   :  { %274 = vmatmul.mubr.msk.f32.gmra.mrb[6].mxu0 %vm76_vm0, %v19_v22  ;;  %278 = vmatmul.mubr.msk.f32.gmra.mrb[6].mxu1 %vm76_vm0, %v23_v23 }
  0x85   :  { %v39_v24 = vpop.permute.xlu0 %38  ;;  %v49_v25 = vpop.permute.xlu1 %48 }
  0x89   :  { %v44_v26 = vpop.permute.xlu0 %43  ;;  %v54_v27 = vpop.permute.xlu1 %53 }
  0x8d   :  { %v59_v28 = vpop.permute.xlu0 %58  ;;  %v64_v37 = vpop.permute.xlu1 %63 }
  0x91   :  { %v69_v48 = vpop.permute.xlu0 %68  ;;  %v74_v59 = vpop.permute.xlu1 %73 }
  0xdb   :  { %v167_v29 = vpop.f32.mrb[0].mxu0  ;;  %v191_v30 = vpop.f32.mrb[0].mxu1 }
  0xdc   :  { %v168_v31 = vadd.f32 %v167_v29, %v39_v24  ;;  %v192_v32 = vadd.f32 %v191_v30, %v59_v28  ;;  %v169_v33 = vpop.f32.mrb[1].mxu0  ;;  %v193_v34 = vpop.f32.mrb[1].mxu1 }
  0xdd   :  { %v170_v35 = vadd.f32 %v169_v33, %v39_v24  ;;  %v194_v36 = vadd.f32 %v193_v34, %v59_v28 }
  0xde   :  { %214 = vst [vmem:[%s467_s3] sm:$0xff] %v168_v31  ;;  %222 = vst [vmem:[%s467_s3 + $0x40] sm:$0xff] %v192_v32 }
  0xdf   :  { %215 = vst [vmem:[%s467_s3 + $0x8] sm:$0xff] %v170_v35  ;;  %223 = vst [vmem:[%s467_s3 + $0x48] sm:$0xff] %v194_v36  ;;  %v173_v38 = vpop.f32.mrb[2].mxu0  ;;  %v197_v39 = vpop.f32.mrb[2].mxu1  ;;  %v242_v40 = vmax.f32 %v192_v32, %v194_v36  ;;  %v230_v41 = vmax.f32 %v168_v31, %v170_v35 }
  0xe0   :  { %v174_v42 = vadd.f32 %v173_v38, %v44_v26  ;;  %v198_v43 = vadd.f32 %v197_v39, %v64_v37  ;;  %v175_v44 = vpop.f32.mrb[3].mxu0  ;;  %v199_v45 = vpop.f32.mrb[3].mxu1 }
  0xe1   :  { %v176_v46 = vadd.f32 %v175_v44, %v44_v26  ;;  %v200_v47 = vadd.f32 %v199_v45, %v64_v37  ;;  %243 = vmax.xlane.f32.xlu1 %v242_v40  ;;  %231 = vmax.xlane.f32.xlu0 %v230_v41 }
  0xe2   :  { %216 = vst [vmem:[%s467_s3 + $0x10] sm:$0xff] %v174_v42  ;;  %224 = vst [vmem:[%s467_s3 + $0x50] sm:$0xff] %v198_v43 }
  0xe3   :  { %217 = vst [vmem:[%s467_s3 + $0x18] sm:$0xff] %v176_v46  ;;  %225 = vst [vmem:[%s467_s3 + $0x58] sm:$0xff] %v200_v47  ;;  %v179_v49 = vpop.f32.mrb[4].mxu0  ;;  %v203_v50 = vpop.f32.mrb[4].mxu1  ;;  %v233_v51 = vmax.f32 %v174_v42, %v176_v46  ;;  %v245_v52 = vmax.f32 %v198_v43, %v200_v47 }
  0xe4   :  { %v180_v53 = vadd.f32 %v179_v49, %v49_v25  ;;  %v204_v54 = vadd.f32 %v203_v50, %v69_v48  ;;  %v181_v55 = vpop.f32.mrb[5].mxu0  ;;  %v205_v56 = vpop.f32.mrb[5].mxu1 }
  0xe5   :  { %v182_v57 = vadd.f32 %v181_v55, %v49_v25  ;;  %v206_v58 = vadd.f32 %v205_v56, %v69_v48  ;;  %234 = vmax.xlane.f32.xlu1 %v233_v51  ;;  %246 = vmax.xlane.f32.xlu0 %v245_v52 }
  0xe6   :  { %218 = vst [vmem:[%s467_s3 + $0x20] sm:$0xff] %v180_v53  ;;  %226 = vst [vmem:[%s467_s3 + $0x60] sm:$0xff] %v204_v54 }
  0xe7   :  { %219 = vst [vmem:[%s467_s3 + $0x28] sm:$0xff] %v182_v57  ;;  %227 = vst [vmem:[%s467_s3 + $0x68] sm:$0xff] %v206_v58  ;;  %v185_v60 = vpop.f32.mrb[6].mxu0  ;;  %v209_v61 = vpop.f32.mrb[6].mxu1  ;;  %v248_v62 = vmax.f32 %v204_v54, %v206_v58  ;;  %v236_v63 = vmax.f32 %v180_v53, %v182_v57 }
  0xe8   :  { %v186_v0 = vadd.f32 %v185_v60, %v54_v27  ;;  %v210_v1 = vadd.f32 %v209_v61, %v74_v59  ;;  %v187_v2 = vpop.f32.mrb[7].mxu0  ;;  %v211_v3 = vpop.f32.mrb[7].mxu1 }
  0xe9   :  { %v188_v4 = vadd.f32 %v187_v2, %v54_v27  ;;  %v212_v5 = vadd.f32 %v211_v3, %v74_v59  ;;  %249 = vmax.xlane.f32.xlu1 %v248_v62  ;;  %237 = vmax.xlane.f32.xlu0 %v236_v63 }
  0xea   :  { %220 = vst [vmem:[%s467_s3 + $0x30] sm:$0xff] %v186_v0  ;;  %228 = vst [vmem:[%s467_s3 + $0x70] sm:$0xff] %v210_v1 }
  0xeb   :  { %221 = vst [vmem:[%s467_s3 + $0x38] sm:$0xff] %v188_v4  ;;  %229 = vst [vmem:[%s467_s3 + $0x78] sm:$0xff] %v212_v5  ;;  %v239_v6 = vmax.f32 %v186_v0, %v188_v4  ;;  %v251_v7 = vmax.f32 %v210_v1, %v212_v5 }
  0xed   :  { %240 = vmax.xlane.f32.xlu0 %v239_v6 }
  0xf1   :  { %252 = vmax.xlane.f32.xlu0 %v251_v7 }
 0x16e   :  { %v244_v8 = vpop.xlane.xlu1 %243  ;;  %v232_v9 = vpop.xlane.xlu0 %231 }
 0x16f   :  { %259 = vst.msk [vmem:[%s468_s4 + $0x20] sm:$0xff] %vm254_vm1, %v244_v8  ;;  %255 = vst.msk [vmem:[%s468_s4] sm:$0xff] %vm254_vm1, %v232_v9 }
 0x172   :  { %v235_v10 = vpop.xlane.xlu1 %234  ;;  %v247_v11 = vpop.xlane.xlu0 %246 }
 0x173   :  { %256 = vst.msk [vmem:[%s468_s4 + $0x8] sm:$0xff] %vm254_vm1, %v235_v10  ;;  %260 = vst.msk [vmem:[%s468_s4 + $0x28] sm:$0xff] %vm254_vm1, %v247_v11 }
 0x176   :  { %v250_v12 = vpop.xlane.xlu1 %249  ;;  %v238_v13 = vpop.xlane.xlu0 %237 }
 0x177   :  { %261 = vst.msk [vmem:[%s468_s4 + $0x30] sm:$0xff] %vm254_vm1, %v250_v12  ;;  %257 = vst.msk [vmem:[%s468_s4 + $0x10] sm:$0xff] %vm254_vm1, %v238_v13 }
 0x17a   :  { %v241_v14 = vpop.xlane.xlu0 %240 }
 0x17b   :  { %258 = vst.msk [vmem:[%s468_s4 + $0x18] sm:$0xff] %vm254_vm1, %v241_v14 }
 0x17e   :  { %v253_v15 = vpop.xlane.xlu0 %252 }
 0x17f   :  { %262 = vst.msk [vmem:[%s468_s4 + $0x38] sm:$0xff] %vm254_vm1, %v253_v15 }

// kernel: reverse
= control target key start
LH: loop header
LB: loop body
LE: loop exit
PB: predicated region body
PF: predicated region fallthrough
CT: control target
= control target key end

     0   :  { %v62_v3 = vmov 0.0   ;;  %s127_s0 = inlined_call_operand.vmem [shape: f32[4,16,3,3], index: 0, kind: input, shape index: {}]   ;;  %s128_s1 = inlined_call_operand.vmem [shape: bf16[4,16,3,3], index: 1, kind: output, shape index: {}]  }
   0x1   :  { %v45_v0 = vld [vmem:[%s127_s0 + $0x20] sm:$0xf]  ;;  %v46_v1 = vld [vmem:[%s127_s0 + $0x14] sm:$0xf]  ;;  %v48_v2 = vld [vmem:[%s127_s0 + $0x8] sm:$0xf] }
   0x2   :  { %v4_v4 = vpack.c.bf16 %v62_v3, %v45_v0  ;;  %v9_v5 = vpack.c.bf16 %v62_v3, %v46_v1  ;;  %v14_v6 = vpack.c.bf16 %v62_v3, %v48_v2  ;;  %v50_v7 = vld [vmem:[%s127_s0 + $0x1c] sm:$0xf]  ;;  %v52_v8 = vld [vmem:[%s127_s0 + $0x10] sm:$0xf]  ;;  %v54_v9 = vld [vmem:[%s127_s0 + $0x4] sm:$0xf] }
   0x3   :  { %v19_v10 = vpack.c.bf16 %v62_v3, %v50_v7  ;;  %v24_v11 = vpack.c.bf16 %v62_v3, %v52_v8  ;;  %v29_v12 = vpack.c.bf16 %v62_v3, %v54_v9  ;;  %v56_v13 = vld [vmem:[%s127_s0 + $0x18] sm:$0xf]  ;;  %v58_v14 = vld [vmem:[%s127_s0 + $0xc] sm:$0xf]  ;;  %v41_v15 = vld [vmem:[%s127_s0] sm:$0xf] }
   0x4   :  { %5 = vst [vmem:[%s128_s1] sm:$0x3] %v4_v4  ;;  %47 = vst [vmem:[%s128_s1 + $0x6] sm:$0x3] %v9_v5  ;;  %v34_v16 = vpack.c.bf16 %v62_v3, %v56_v13  ;;  %v39_v17 = vpack.c.bf16 %v62_v3, %v58_v14  ;;  %v43_v18 = vpack.c.bf16 %v62_v3, %v41_v15 }
   0x5   :  { %49 = vst [vmem:[%s128_s1 + $0xc] sm:$0x3] %v14_v6  ;;  %51 = vst [vmem:[%s128_s1 + $0x2] sm:$0x3] %v19_v10 }
   0x6   :  { %53 = vst [vmem:[%s128_s1 + $0x8] sm:$0x3] %v24_v11  ;;  %55 = vst [vmem:[%s128_s1 + $0xe] sm:$0x3] %v29_v12 }
   0x7   :  { %57 = vst [vmem:[%s128_s1 + $0x4] sm:$0x3] %v34_v16  ;;  %59 = vst [vmem:[%s128_s1 + $0xa] sm:$0x3] %v39_v17 }
   0x8   :  { %60 = vst [vmem:[%s128_s1 + $0x10] sm:$0x3] %v43_v18 }

// kernel: tile.18
= control target key start
LH: loop header
LB: loop body
LE: loop exit
PB: predicated region body
PF: predicated region fallthrough
CT: control target
= control target key end

     0   :  { %s22_s0 = inlined_call_operand.vmem [shape: f32[4], index: 0, kind: input, shape index: {}]   ;;  %s23_s1 = inlined_call_operand.vmem [shape: f32[4,4], index: 1, kind: output, shape index: {}]  }
   0x1   :  { %v4_v0 = vld [vmem:[%s22_s0] ss:$0 sm:$0xff] }
   0x2   :  { %5 = vst [vmem:[%s23_s1] sm:$0xf] %v4_v0 }

// kernel: tile.1
= control target key start
LH: loop header
LB: loop body
LE: loop exit
PB: predicated region body
PF: predicated region fallthrough
CT: control target
= control target key end

     0   :  { %s34_s8 = smov 125   ;;  %vm7_vm0 = vcmask 7168   ;;  %s35_s11 = smov 126   ;;  %s61_s0 = inlined_call_operand.vmem [shape: f32[4,4], index: 0, kind: input, shape index: {}]   ;;  %s62_s1 = inlined_call_operand.vmem [shape: f32[16,1], index: 1, kind: output, shape index: {}]  }
   0x1   :  { %v4_v0 = vld [vmem:[%s61_s0] sm:$0xf]  ;;  %s33_s0 = smov 127  }
   0x2   :  { %5 = vst [vmem:[#allocation0] sm:$0xf] %v4_v0 }
   0x9   :  { %v9_v1 = vld [vmem:[#allocation0] sm:$0xf]  }
   0xa   :  { %v21_v2 = vld [vmem:[#allocation0] sm:$0xf]   ;;  %10 = vrot.lane.b32.xlu0 %v9_v1, %s33_s0 }
   0xb   :  { %22 = vrot.lane.b32.xlu1 %v21_v2, %s34_s8  ;;  %v6_v3 = vld [vmem:[#allocation0] sm:$0xf]  }
   0xc   :  { %v15_v4 = vld [vmem:[#allocation0] sm:$0xf]   ;;  %8 = vst.msk [vmem:[%s62_s1] ss:$4 sm:$0xf] %vm7_vm0, %v6_v3  }
   0xe   :  { %16 = vrot.lane.b32.xlu0 %v15_v4, %s35_s11 }
  0x7c   :  { %v11_v5 = vpop.permute.xlu0 %10  }
  0x7d   :  { %v23_v6 = vpop.permute.xlu1 %22   ;;  %27 = vst.msk [vmem:[%s62_s1 + $0x1] ss:$4 sm:$0xf] %vm7_vm0, %v11_v5  }
  0x7e   :  { %29 = vst.msk [vmem:[%s62_s1 + $0x3] ss:$4 sm:$0xf] %vm7_vm0, %v23_v6  }
  0x80   :  { %v17_v7 = vpop.permute.xlu0 %16  }
  0x81   :  { %28 = vst.msk [vmem:[%s62_s1 + $0x2] ss:$4 sm:$0xf] %vm7_vm0, %v17_v7  }

// kernel: attention_propagation_forward.3
= control target key start
LH: loop header
LB: loop body
LE: loop exit
PB: predicated region body
PF: predicated region fallthrough
CT: control target
= control target key end

     0   :  { %vm42_vm0 = vcmask 1043456   ;;  %v1426_v1 = vmov 0.0   ;;  %vm35_vm1 = vcmask 31744   ;;  %vm130_vm2 = vcmask 130048   ;;  %s1427_s16 = smov 17   ;;  %s1429_s17 = smov 127   ;;  %s1864_s2 = inlined_call_operand.vmem [shape: f32[4,256], index: 2, kind: input, shape index: {}]   ;;  %s1865_s1 = inlined_call_operand.vmem [shape: f32[16,4], index: 1, kind: input, shape index: {}]   ;;  %s1866_s0 = inlined_call_operand.vmem [shape: f32[16,256], index: 0, kind: input, shape index: {}]   ;;  %s1867_s4 = inlined_call_operand.vmem [shape: f32[16,16], index: 4, kind: input, shape index: {}]   ;;  %s1868_s5 = inlined_call_operand.vmem [shape: f32[16,1], index: 5, kind: input, shape index: {}]   ;;  %s1869_s6 = inlined_call_operand.vmem [shape: f32[9,256], index: 6, kind: input, shape index: {}]   ;;  %s1870_s3 = inlined_call_operand.vmem [shape: f32[9,16,16], index: 3, kind: input, shape index: {}]   ;;  %s1871_s7 = inlined_call_operand.vmem [shape: f32[16,256], index: 7, kind: output, shape index: {}]  }
   0x1   :  { %v32_v0 = vld [vmem:[%s1864_s2] sm:$0xff]  ;;  %111 = vmatprep.mubr.f32.mxu0 %v1426_v1  ;;  %117 = vmatprep.mubr.f32.mxu1 %v1426_v1  ;;  %v27_v3 = vld [vmem:[%s1866_s0 + $0x8] sm:$0xff]  ;;  %v29_v4 = vld [vmem:[%s1866_s0 + $0x18] sm:$0xff]  ;;  %s1430_s18 = smov 113   ;;  %s1431_s19 = smov 16   ;;  %v1435_v47 = vmov 0   ;;  %v253_v58 = vlaneseq }
   0x2   :  { %v34_v2 = vcombine.high %v32_v0, %v32_v0  ;;  %v26_v5 = vld [vmem:[%s1866_s0] sm:$0xff]  ;;  %v31_v7 = vld [vmem:[%s1865_s1 + $0x8] sm:$0xff]  ;;  %v1323_v8 = vpack.c.bf16 %v29_v4, %v27_v3  ;;  %v28_v9 = vld [vmem:[%s1866_s0 + $0x10] sm:$0xff]  ;;  %s1432_s20 = smov 112   ;;  %s1433_s21 = smov 15   ;;  %1407 = vset.pattern.permute.xlu0 %v1435_v47  ;;  %1408 = vset.pattern.permute.xlu1 %v1435_v47 }
   0x3   :  { %v30_v6 = vld [vmem:[%s1865_s1] sm:$0xff]  ;;  %v1325_v10 = vpack.c.bf16 %v28_v9, %v26_v5  ;;  %v129_v12 = vld [vmem:[%s1867_s4 + $0x8] sm:$0xff]  ;;  %s1434_s22 = smov 111   ;;  %v1615_v61 = vshrl.u32 %v253_v58, 7 }
   0x4   :  { %1277 = vmatprep.subr.msk.mxu0 %vm42_vm0, %v34_v2  ;;  %1363 = vmatprep.subr.msk.mxu1 %vm42_vm0, %v34_v2  ;;  %v128_v11 = vld [vmem:[%s1867_s4] sm:$0xff]  ;;  %s1428_s4 = smov 1   ;;  %v1254_v49 = vld [vmem:[%s1868_s5 + $0x8] sm:$0xff] }
   0x5   :  { %1278 = vmatpush1.msk.msra.mxu0 %vm42_vm0, %v32_v0  ;;  %1364 = vmatpush1.msk.msra.mxu1 %vm42_vm0, %v32_v0  ;;  %v1253_v48 = vld [vmem:[%s1868_s5] sm:$0xff]  ;;  %v1621_v0 = vand.u32 127, %v253_v58  ;;  %v685_v2 = vsub.s32 3, %v1615_v61 }
   0x6   :  { %1279 = vmatmul.mubr.msk.f32.vlgmr.msra.gmra.mrb[0].mxu0 %vm35_vm1, %v30_v6  ;;  %1280 = vmatmul.mubr.msk.f32.vlgmr.msra.gmra.mrb[0].mxu1 %vm35_vm1, %v31_v7  ;;  %v262_v7 = vsub.s32 0, %v1615_v61 }
   0x7   :  { %1324 = vmatprep.subr.bf16.mxu1 %v1323_v8  ;;  %201 = vmatprep.mubr.f32.mxu1 %v1426_v1  ;;  %vm678_vm3 = vcmp.lt.s32.totalorder %v1621_v0, 1  ;;  %vm255_vm4 = vcmp.lt.s32.totalorder %v1621_v0, 17  ;;  %vm793_vm5 = vcmp.lt.s32.totalorder %v1621_v0, 127  ;;  %vm908_vm6 = vcmp.lt.s32.totalorder %v1621_v0, 113 }
   0x8   :  { %1326 = vmatpush1.bf16.msra.mxu1 %v1325_v10  ;;  %768 = vmatprep.mubr.f32.mxu0 %v1426_v1  ;;  %vm448_vm7 = vcmp.lt.s32.totalorder %v1621_v0, 16  ;;  %vm1023_vm8 = vcmp.lt.s32.totalorder %v1621_v0, 112  ;;  %vm563_vm9 = vcmp.lt.s32.totalorder %v1621_v0, 15  ;;  %vm1138_vm10 = vcmp.lt.s32.totalorder %v1621_v0, 111  ;;  %v1297_v0 = vld [vmem:[%s1870_s3 + $0x20] sm:$0xff] }
   0xb   :  { %1281 = vmatmul.mubr.msk.f32.vlgmr.msra.gmra.mrb[2].mxu1 %vm130_vm2, %v128_v11 }
   0xc   :  { %207 = vmatprep.mubr.f32.mxu1 %v1426_v1 }
   0xf   :  { %1282 = vmatmul.mubr.msk.f32.gmra.mrb[4].mxu1 %vm130_vm2, %v129_v12 }
  0x10   :  { %344 = vmatprep.mubr.f32.mxu1 %v1426_v1 }
  0xd9   :  { %v113_v13 = vpop.f32.mrb[0].mxu0  ;;  %v119_v14 = vpop.f32.mrb[0].mxu1 }
  0xda   :  { %v1515_v15 = vmul.f32 %v113_v13, %v26_v5  ;;  %v1517_v16 = vmul.f32 %v119_v14, %v28_v9  ;;  %v115_v17 = vpop.f32.mrb[1].mxu0  ;;  %v121_v18 = vpop.f32.mrb[1].mxu1  ;;  %v800_v14 = vsub.s32 5, %v1615_v61 }
  0xdb   :  { %v1519_v19 = vmul.f32 %v115_v17, %v27_v3  ;;  %v1521_v20 = vmul.f32 %v121_v18, %v29_v4  ;;  %v1627_v3 = vld [vmem:[%s1869_s6] sm:$0xff]  ;;  %v1632_v4 = vld [vmem:[%s1869_s6 + $0x8] sm:$0xff] }
  0xdc   :  { %247 = vrot.lane.b32.xlu1 %v1517_v16, %s1427_s16  ;;  %670 = vrot.lane.b32.xlu0 %v1515_v15, %s1428_s4  ;;  %v1333_v21 = vpack.c.bf16 %v1517_v16, %v1515_v15  ;;  %v686_v8 = vrot.slane %v1627_v3, %v685_v2  ;;  %v690_v9 = vrot.slane %v1632_v4, %v685_v2 }
  0xdd   :  { %v1331_v22 = vpack.c.bf16 %v1521_v20, %v1519_v19 }
  0xde   :  { %v203_v23 = vpop.f32.mrb[2].mxu1 }
  0xdf   :  { %v1283_v24 = vmul.f32 -1.442695, %v203_v23  ;;  %v205_v25 = vpop.f32.mrb[3].mxu1  ;;  %v263_v23 = vrot.slane %v1627_v3, %v262_v7 }
  0xe0   :  { %v1284_v26 = vmul.f32 -1.442695, %v205_v25  ;;  %787 = vrot.lane.b32.xlu1 %v1517_v16, %s1429_s17  ;;  %672 = vrot.lane.b32.xlu0 %v1517_v16, %s1428_s4 }
  0xe1   :  { %1410 = vpow2.f32 %v1283_v24  ;;  %v267_v24 = vrot.slane %v1632_v4, %v262_v7 }
  0xe2   :  { %1412 = vpow2.f32 %v1284_v26  ;;  %v209_v27 = vpop.f32.mrb[4].mxu1 }
  0xe3   :  { %v1285_v28 = vmul.f32 -1.442695, %v209_v27  ;;  %v211_v29 = vpop.f32.mrb[5].mxu1 }
  0xe4   :  { %v1286_v30 = vmul.f32 -1.442695, %v211_v29  ;;  %902 = vrot.lane.b32.xlu1 %v1517_v16, %s1430_s18  ;;  %245 = vrot.lane.b32.xlu0 %v1515_v15, %s1427_s16 }
  0xe5   :  { %1414 = vpow2.f32 %v1285_v28 }
  0xe6   :  { %1416 = vpow2.f32 %v1286_v30 }
  0xe8   :  { %442 = vrot.lane.b32.xlu1 %v1517_v16, %s1431_s19  ;;  %785 = vrot.lane.b32.xlu0 %v1515_v15, %s1429_s17 }
  0xeb   :  { %v1411_v31 = vpop.eup %1410 }
  0xec   :  { %v1413_v32 = vpop.eup %1412  ;;  %v226_v33 = vadd.f32 1.0, %v1411_v31  ;;  %1017 = vrot.lane.b32.xlu1 %v1517_v16, %s1432_s20  ;;  %900 = vrot.lane.b32.xlu0 %v1515_v15, %s1430_s18 }
  0xed   :  { %v227_v34 = vadd.f32 1.0, %v1413_v32 }
  0xee   :  { %1418 = vrcp.f32 %v226_v33  ;;  %v801_v33 = vrot.slane %v1627_v3, %v800_v14 }
  0xef   :  { %v1415_v35 = vpop.eup %1414  ;;  %1420 = vrcp.f32 %v227_v34  ;;  %v805_v34 = vrot.slane %v1632_v4, %v800_v14  ;;  %v1302_v14 = vld [vmem:[%s1870_s3 + $0x38] sm:$0xff] }
  0xf0   :  { %v1417_v36 = vpop.eup %1416  ;;  %v228_v37 = vadd.f32 1.0, %v1415_v35  ;;  %557 = vrot.lane.b32.xlu1 %v1517_v16, %s1433_s21  ;;  %440 = vrot.lane.b32.xlu0 %v1515_v15, %s1431_s19 }
  0xf1   :  { %v229_v38 = vadd.f32 1.0, %v1417_v36 }
  0xf2   :  { %1422 = vrcp.f32 %v228_v37 }
  0xf3   :  { %1424 = vrcp.f32 %v229_v38 }
  0xf4   :  { %674 = vrot.lane.b32.xlu1 %v1519_v19, %s1428_s4  ;;  %1015 = vrot.lane.b32.xlu0 %v1515_v15, %s1432_s20 }
  0xf8   :  { %v1419_v39 = vpop.eup %1418  ;;  %676 = vrot.lane.b32.xlu1 %v1521_v20, %s1428_s4  ;;  %555 = vrot.lane.b32.xlu0 %v1515_v15, %s1433_s21 }
  0xf9   :  { %v1421_v40 = vpop.eup %1420  ;;  %v1560_v41 = vmul.f32 %v1419_v39, %v1515_v15 }
  0xfa   :  { %v1563_v42 = vmul.f32 %v1421_v40, %v1519_v19 }
  0xfc   :  { %v1423_v43 = vpop.eup %1422  ;;  %251 = vrot.lane.b32.xlu1 %v1521_v20, %s1427_s16  ;;  %249 = vrot.lane.b32.xlu0 %v1519_v19, %s1427_s16 }
  0xfd   :  { %v1425_v44 = vpop.eup %1424  ;;  %v1570_v45 = vmul.f32 %v1423_v43, %v1517_v16 }
  0xfe   :  { %v1573_v46 = vmul.f32 %v1425_v44, %v1521_v20 }
 0x100   :  { %791 = vrot.lane.b32.xlu1 %v1521_v20, %s1429_s17  ;;  %789 = vrot.lane.b32.xlu0 %v1519_v19, %s1429_s17 }
 0x104   :  { %1132 = vrot.lane.b32.xlu1 %v1517_v16, %s1434_s22  ;;  %1130 = vrot.lane.b32.xlu0 %v1515_v15, %s1434_s22  ;;  %v1030_v16 = vsub.s32 7, %v1615_v61 }
 0x108   :  { %906 = vrot.lane.b32.xlu1 %v1521_v20, %s1430_s18  ;;  %904 = vrot.lane.b32.xlu0 %v1519_v19, %s1430_s18 }
 0x10c   :  { %446 = vrot.lane.b32.xlu1 %v1521_v20, %s1431_s19  ;;  %444 = vrot.lane.b32.xlu0 %v1519_v19, %s1431_s19 }
 0x110   :  { %1021 = vrot.lane.b32.xlu1 %v1521_v20, %s1432_s20  ;;  %1019 = vrot.lane.b32.xlu0 %v1519_v19, %s1432_s20 }
 0x114   :  { %561 = vrot.lane.b32.xlu1 %v1521_v20, %s1433_s21  ;;  %559 = vrot.lane.b32.xlu0 %v1519_v19, %s1433_s21 }
 0x118   :  { %1136 = vrot.lane.b32.xlu1 %v1521_v20, %s1434_s22  ;;  %1134 = vrot.lane.b32.xlu0 %v1519_v19, %s1434_s22  ;;  %v273_v20 = vld [vmem:[%s1870_s3 + $0x8] sm:$0xff] }
 0x11c   :  { %1257 = vperm.xlu0 %1407, %v1253_v48   ;;  %1262 = vperm.xlu1 %1408, %v1254_v49  }
 0x14e   :  { %v248_v50 = vpop.permute.xlu1 %247  ;;  %v671_v51 = vpop.permute.xlu0 %670 }
 0x152   :  { %v1605_v52 = vpop.permute.xlu1 %787  ;;  %v673_v53 = vpop.permute.xlu0 %672 }
 0x156   :  { %v1607_v54 = vpop.permute.xlu1 %902  ;;  %v246_v55 = vpop.permute.xlu0 %245 }
 0x15a   :  { %v1609_v56 = vpop.permute.xlu1 %442  ;;  %v786_v57 = vpop.permute.xlu0 %785 }
 0x15e   :  { %v1611_v59 = vpop.permute.xlu1 %1017  ;;  %v1613_v60 = vpop.permute.xlu0 %900 }
 0x162   :  { %v1617_v62 = vpop.permute.xlu1 %557  ;;  %v1619_v63 = vpop.permute.xlu0 %440 }
 0x166   :  { %v675_v5 = vpop.permute.xlu1 %674  ;;  %v1635_v6 = vpop.permute.xlu0 %1015 }
 0x167   :  { %v679_v10 = vsel %vm678_vm3, %v671_v51, %v675_v5  ;;  %v681_v11 = vsel %vm678_vm3, %v675_v5, %v671_v51 }
 0x168   :  { %v691_v25 = vmul.f32 %v686_v8, %v681_v11  ;;  %v692_v26 = vmul.f32 %v690_v9, %v679_v10  ;;  %v272_v11 = vld [vmem:[%s1870_s3] sm:$0xff] }
 0x16a   :  { %v677_v12 = vpop.permute.xlu1 %676  ;;  %v1640_v13 = vpop.permute.xlu0 %555 }
 0x16b   :  { %v680_v17 = vsel %vm678_vm3, %v673_v53, %v677_v12  ;;  %v682_v18 = vsel %vm678_vm3, %v677_v12, %v673_v53  ;;  %v915_v53 = vsub.s32 6, %v1615_v61 }
 0x16c   :  { %v693_v27 = vmul.f32 %v686_v8, %v682_v18  ;;  %v694_v28 = vmul.f32 %v690_v9, %v680_v17  ;;  %v455_v18 = vsub.s32 1, %v1615_v61 }
 0x16d   :  { %v920_v19 = vrot.slane %v1632_v4, %v915_v53 }
 0x16e   :  { %v1345_v29 = vpack.c.bf16 %v693_v27, %v691_v25  ;;  %v252_v30 = vpop.permute.xlu1 %251  ;;  %v250_v31 = vpop.permute.xlu0 %249  ;;  %v1343_v32 = vpack.c.bf16 %v694_v28, %v692_v26  ;;  %v1305_v25 = vld [vmem:[%s1870_s3 + $0x50] sm:$0xff]  ;;  %v456_v26 = vrot.slane %v1627_v3, %v455_v18  ;;  %v460_v15 = vrot.slane %v1632_v4, %v455_v18 }
 0x16f   :  { %v257_v35 = vsel %vm255_vm4, %v248_v50, %v252_v30  ;;  %v259_v36 = vsel %vm255_vm4, %v252_v30, %v248_v50  ;;  %v256_v37 = vsel %vm255_vm4, %v246_v55, %v250_v31  ;;  %v258_v38 = vsel %vm255_vm4, %v250_v31, %v246_v55  ;;  %v1301_v50 = vld [vmem:[%s1870_s3 + $0x30] sm:$0xff] }
 0x170   :  { %v270_v39 = vmul.f32 %v263_v23, %v259_v36  ;;  %v271_v40 = vmul.f32 %v267_v24, %v257_v35  ;;  %v268_v43 = vmul.f32 %v263_v23, %v258_v38  ;;  %v269_v44 = vmul.f32 %v267_v24, %v256_v37  ;;  %1344 = vmatprep.subr.bf16.mxu0 %v1343_v32  ;;  %v1306_v37 = vld [vmem:[%s1870_s3 + $0x58] sm:$0xff] }
 0x171   :  { %1346 = vmatpush1.bf16.msra.mxu0 %v1345_v29  ;;  %v916_v23 = vrot.slane %v1627_v3, %v915_v53 }
 0x172   :  { %v1329_v47 = vpack.c.bf16 %v270_v39, %v268_v43  ;;  %v792_v48 = vpop.permute.xlu1 %791  ;;  %v790_v49 = vpop.permute.xlu0 %789  ;;  %v1327_v51 = vpack.c.bf16 %v271_v40, %v269_v44  ;;  %v1031_v39 = vrot.slane %v1627_v3, %v1030_v16  ;;  %v1035_v40 = vrot.slane %v1632_v4, %v1030_v16 }
 0x173   :  { %v795_v55 = vsel %vm793_vm5, %v1605_v52, %v792_v48  ;;  %v797_v58 = vsel %vm793_vm5, %v792_v48, %v1605_v52  ;;  %v794_v2 = vsel %vm793_vm5, %v786_v57, %v790_v49  ;;  %v796_v5 = vsel %vm793_vm5, %v790_v49, %v786_v57 }
 0x174   :  { %v808_v7 = vmul.f32 %v801_v33, %v795_v55  ;;  %v809_v8 = vmul.f32 %v805_v34, %v797_v58  ;;  %v806_v9 = vmul.f32 %v801_v33, %v794_v2  ;;  %v807_v10 = vmul.f32 %v805_v34, %v796_v5  ;;  %1328 = vmatprep.subr.bf16.mxu1 %v1327_v51  ;;  %v1309_v5 = vld [vmem:[%s1870_s3 + $0x60] sm:$0xff] }
 0x175   :  { %1303 = vmatmul.mubr.msk.f32.vlgmr.msra.gmra.mrb[2].mxu0 %vm130_vm2, %v1301_v50  ;;  %1330 = vmatpush1.bf16.msra.mxu1 %v1329_v47 }
 0x176   :  { %v1349_v12 = vpack.c.bf16 %v808_v7, %v806_v9  ;;  %v1675_v52 = vpop.permute.xlu1 %1132  ;;  %1332 = vmatprep.subr.bf16.mxu1 %v1331_v22  ;;  %v1680_v57 = vpop.permute.xlu0 %1130  ;;  %774 = vmatprep.mubr.f32.mxu0 %v1426_v1  ;;  %v1347_v17 = vpack.c.bf16 %v809_v8, %v807_v10 }
 0x178   :  { %1289 = vmatmul.mubr.msk.f32.vlgmr.msra.gmra.mrb[6].mxu1 %vm130_vm2, %v272_v11  ;;  %1348 = vmatprep.subr.bf16.mxu0 %v1347_v17 }
 0x179   :  { %1304 = vmatmul.mubr.msk.f32.gmra.mrb[4].mxu0 %vm130_vm2, %v1302_v14  ;;  %1334 = vmatpush1.bf16.msra.mxu1 %v1333_v21 }
 0x17a   :  { %1350 = vmatpush1.bf16.msra.mxu0 %v1349_v12  ;;  %v907_v22 = vpop.permute.xlu1 %906  ;;  %v905_v24 = vpop.permute.xlu0 %904  ;;  %350 = vmatprep.mubr.f32.mxu1 %v1426_v1 }
 0x17b   :  { %v910_v21 = vsel %vm908_vm6, %v1607_v54, %v907_v22  ;;  %v912_v27 = vsel %vm908_vm6, %v907_v22, %v1607_v54  ;;  %v909_v28 = vsel %vm908_vm6, %v1613_v60, %v905_v24  ;;  %v911_v29 = vsel %vm908_vm6, %v905_v24, %v1613_v60  ;;  %883 = vmatprep.mubr.f32.mxu0 %v1426_v1  ;;  %v1287_v54 = vld [vmem:[%s1870_s3 + $0x40] sm:$0xff] }
 0x17c   :  { %v923_v30 = vmul.f32 %v916_v23, %v910_v21  ;;  %v924_v31 = vmul.f32 %v920_v19, %v912_v27  ;;  %v921_v32 = vmul.f32 %v916_v23, %v909_v28  ;;  %v922_v33 = vmul.f32 %v920_v19, %v911_v29  ;;  %1290 = vmatmul.mubr.msk.f32.gmra.mrb[8].mxu1 %vm130_vm2, %v273_v20  ;;  %v1310_v23 = vld [vmem:[%s1870_s3 + $0x68] sm:$0xff]  ;;  %v1318_v27 = vld [vmem:[%s1869_s6 + $0x18] ss:$0 sm:$0xff] }
 0x17d   :  { %1307 = vmatmul.mubr.msk.f32.vlgmr.msra.gmra.mrb[2].mxu0 %vm130_vm2, %v1305_v25  ;;  %427 = vmatprep.mubr.f32.mxu1 %v1426_v1  ;;  %v570_v60 = vsub.s32 2, %v1615_v61 }
 0x17e   :  { %v1353_v34 = vpack.c.bf16 %v923_v30, %v921_v32  ;;  %v447_v35 = vpop.permute.xlu1 %446  ;;  %v445_v36 = vpop.permute.xlu0 %444  ;;  %889 = vmatprep.mubr.f32.mxu0 %v1426_v1  ;;  %v1351_v38 = vpack.c.bf16 %v924_v31, %v922_v33  ;;  %v1294_v30 = vld [vmem:[%s1870_s3 + $0x18] sm:$0xff]  ;;  %v1313_v32 = vld [vmem:[%s1870_s3 + $0x70] sm:$0xff] }
 0x17f   :  { %v450_v43 = vsel %vm448_vm7, %v1609_v56, %v447_v35  ;;  %v452_v61 = vsel %vm448_vm7, %v447_v35, %v1609_v56  ;;  %v449_v44 = vsel %vm448_vm7, %v1619_v63, %v445_v36  ;;  %v451_v47 = vsel %vm448_vm7, %v445_v36, %v1619_v63  ;;  %v1288_v56 = vld [vmem:[%s1870_s3 + $0x48] sm:$0xff] }
 0x180   :  { %v463_v48 = vmul.f32 %v456_v26, %v452_v61  ;;  %v464_v49 = vmul.f32 %v460_v15, %v450_v43  ;;  %v461_v51 = vmul.f32 %v456_v26, %v451_v47  ;;  %v462_v50 = vmul.f32 %v460_v15, %v449_v44  ;;  %1291 = vmatmul.mubr.msk.f32.vlgmr.msra.gmra.mrb[6].mxu1 %vm130_vm2, %v1287_v54  ;;  %v1319_v43 = vld [vmem:[%s1870_s3 + $0x80] sm:$0xff]  ;;  %v1320_v61 = vld [vmem:[%s1870_s3 + $0x88] sm:$0xff] }
 0x181   :  { %1308 = vmatmul.mubr.msk.f32.gmra.mrb[4].mxu0 %vm130_vm2, %v1306_v37  ;;  %1352 = vmatprep.subr.bf16.mxu0 %v1351_v38  ;;  %v571_v53 = vrot.slane %v1627_v3, %v570_v60  ;;  %v575_v7 = vrot.slane %v1632_v4, %v570_v60 }
 0x182   :  { %v1337_v55 = vpack.c.bf16 %v463_v48, %v461_v51  ;;  %1354 = vmatpush1.bf16.msra.mxu0 %v1353_v34  ;;  %v1022_v58 = vpop.permute.xlu1 %1021  ;;  %v1020_v2 = vpop.permute.xlu0 %1019  ;;  %433 = vmatprep.mubr.f32.mxu1 %v1426_v1  ;;  %v1335_v63 = vpack.c.bf16 %v464_v49, %v462_v50 }
 0x183   :  { %v1025_v8 = vsel %vm1023_vm8, %v1611_v59, %v1022_v58  ;;  %v1027_v3 = vsel %vm1023_vm8, %v1022_v58, %v1611_v59  ;;  %v1024_v9 = vsel %vm1023_vm8, %v1635_v6, %v1020_v2  ;;  %v1026_v10 = vsel %vm1023_vm8, %v1020_v2, %v1635_v6  ;;  %998 = vmatprep.mubr.f32.mxu0 %v1426_v1  ;;  %v1293_v6 = vld [vmem:[%s1870_s3 + $0x10] sm:$0xff] }
 0x184   :  { %v1038_v11 = vmul.f32 %v1031_v39, %v1025_v8  ;;  %v1039_v4 = vmul.f32 %v1035_v40, %v1027_v3  ;;  %v1036_v12 = vmul.f32 %v1031_v39, %v1024_v9  ;;  %v1037_v14 = vmul.f32 %v1035_v40, %v1026_v10  ;;  %1292 = vmatmul.mubr.msk.f32.gmra.mrb[8].mxu1 %vm130_vm2, %v1288_v56  ;;  %v1298_v40 = vld [vmem:[%s1870_s3 + $0x28] sm:$0xff] }
 0x185   :  { %1336 = vmatprep.subr.bf16.mxu1 %v1335_v63  ;;  %1311 = vmatmul.mubr.msk.f32.vlgmr.msra.gmra.mrb[2].mxu0 %vm130_vm2, %v1309_v5 }
 0x186   :  { %v1357_v59 = vpack.c.bf16 %v1038_v11, %v1036_v12  ;;  %1338 = vmatpush1.bf16.msra.mxu1 %v1337_v55  ;;  %v562_v17 = vpop.permute.xlu1 %561  ;;  %v560_v18 = vpop.permute.xlu0 %559  ;;  %538 = vmatprep.mubr.f32.mxu1 %v1426_v1  ;;  %v1355_v19 = vpack.c.bf16 %v1039_v4, %v1037_v14 }
 0x187   :  { %v565_v20 = vsel %vm563_vm9, %v1617_v62, %v562_v17  ;;  %v567_v22 = vsel %vm563_vm9, %v562_v17, %v1617_v62  ;;  %v564_v24 = vsel %vm563_vm9, %v1640_v13, %v560_v18  ;;  %v566_v25 = vsel %vm563_vm9, %v560_v18, %v1640_v13  ;;  %1004 = vmatprep.mubr.f32.mxu0 %v1426_v1  ;;  %v1317_v62 = vld [vmem:[%s1869_s6 + $0x10] ss:$0 sm:$0xff] }
 0x188   :  { %v578_v26 = vmul.f32 %v571_v53, %v567_v22  ;;  %v579_v15 = vmul.f32 %v575_v7, %v565_v20  ;;  %v576_v16 = vmul.f32 %v571_v53, %v566_v25  ;;  %v577_v21 = vmul.f32 %v575_v7, %v564_v24  ;;  %1356 = vmatprep.subr.bf16.mxu0 %v1355_v19 }
 0x189   :  { %1295 = vmatmul.mubr.msk.f32.vlgmr.msra.gmra.mrb[6].mxu1 %vm130_vm2, %v1293_v6  ;;  %1312 = vmatmul.mubr.msk.f32.gmra.mrb[4].mxu0 %vm130_vm2, %v1310_v23 }
 0x18a   :  { %v1341_v13 = vpack.c.bf16 %v578_v26, %v576_v16  ;;  %1358 = vmatpush1.bf16.msra.mxu0 %v1357_v59  ;;  %v1137_v28 = vpop.permute.xlu1 %1136  ;;  %v1135_v29 = vpop.permute.xlu0 %1134  ;;  %544 = vmatprep.mubr.f32.mxu1 %v1426_v1  ;;  %v1339_v31 = vpack.c.bf16 %v579_v15, %v577_v21 }
 0x18b   :  { %v1140_v33 = vsel %vm1138_vm10, %v1675_v52, %v1137_v28  ;;  %v1142_v54 = vsel %vm1138_vm10, %v1137_v28, %v1675_v52  ;;  %v1139_v60 = vsel %vm1138_vm10, %v1680_v57, %v1135_v29  ;;  %v1141_v34 = vsel %vm1138_vm10, %v1135_v29, %v1680_v57  ;;  %1113 = vmatprep.mubr.f32.mxu0 %v1426_v1  ;;  %v1314_v57 = vld [vmem:[%s1870_s3 + $0x78] sm:$0xff] }
 0x18c   :  { %v1153_v35 = vmul.f32 %v1317_v62, %v1140_v33  ;;  %v1154_v36 = vmul.f32 %v1318_v27, %v1142_v54  ;;  %v1151_v37 = vmul.f32 %v1317_v62, %v1139_v60  ;;  %v1152_v38 = vmul.f32 %v1318_v27, %v1141_v34  ;;  %1340 = vmatprep.subr.bf16.mxu1 %v1339_v31 }
 0x18d   :  { %1296 = vmatmul.mubr.msk.f32.gmra.mrb[8].mxu1 %vm130_vm2, %v1294_v30  ;;  %1315 = vmatmul.mubr.msk.f32.vlgmr.msra.gmra.mrb[2].mxu0 %vm130_vm2, %v1313_v32 }
 0x18e   :  { %v1361_v52 = vpack.c.bf16 %v1153_v35, %v1151_v37  ;;  %1342 = vmatpush1.bf16.msra.mxu1 %v1341_v13  ;;  %653 = vmatprep.mubr.f32.mxu1 %v1426_v1  ;;  %v1359_v39 = vpack.c.bf16 %v1154_v36, %v1152_v38 }
 0x18f   :  { %1119 = vmatprep.mubr.f32.mxu0 %v1426_v1 }
 0x190   :  { %1360 = vmatprep.subr.bf16.mxu0 %v1359_v39 }
 0x191   :  { %1299 = vmatmul.mubr.msk.f32.vlgmr.msra.gmra.mrb[6].mxu1 %vm130_vm2, %v1297_v0  ;;  %1316 = vmatmul.mubr.msk.f32.gmra.mrb[4].mxu0 %vm130_vm2, %v1314_v57 }
 0x192   :  { %1362 = vmatpush1.bf16.msra.mxu0 %v1361_v52  ;;  %659 = vmatprep.mubr.f32.mxu1 %v1426_v1 }
 0x193   :  { %1228 = vmatprep.mubr.f32.mxu0 %v1426_v1 }
 0x195   :  { %1300 = vmatmul.mubr.msk.f32.gmra.mrb[8].mxu1 %vm130_vm2, %v1298_v40  ;;  %1321 = vmatmul.mubr.msk.f32.vlgmr.msra.gmra.mrb[2].mxu0 %vm130_vm2, %v1319_v43 }
 0x196   :  { %1234 = vmatprep.mubr.f32.mxu0 %v1426_v1 }
 0x199   :  { %1322 = vmatmul.mubr.msk.f32.gmra.mrb[4].mxu0 %vm130_vm2, %v1320_v61 }
 0x19b   :  { %v1258_v55 = vpop.permute.xlu0 %1257  ;;  %v1263_v9 = vpop.permute.xlu1 %1262 }
 0x264   :  { %v655_v44 = vpop.f32.mrb[6].mxu1 }
 0x265   :  { %v657_v47 = vpop.f32.mrb[7].mxu1 }
 0x268   :  { %v661_v48 = vpop.f32.mrb[8].mxu1  ;;  %v1230_v49 = vpop.f32.mrb[2].mxu0 }
 0x269   :  { %v1365_v51 = vadd.f32 %v1230_v49, %v655_v44  ;;  %v663_v50 = vpop.f32.mrb[9].mxu1  ;;  %v1232_v56 = vpop.f32.mrb[3].mxu0 }
 0x26a   :  { %v1366_v53 = vadd.f32 %v1232_v56, %v657_v47 }
 0x26b   :  { %v1249_v58 = vadd.f32 %v1365_v51, %v1560_v41 }
 0x26c   :  { %v1236_v2 = vpop.f32.mrb[4].mxu0  ;;  %v1250_v1 = vadd.f32 %v1366_v53, %v1563_v42 }
 0x26d   :  { %v1367_v63 = vadd.f32 %v1236_v2, %v661_v48  ;;  %v1265_v5 = vadd.f32 %v1258_v55, %v1249_v58  ;;  %v1238_v7 = vpop.f32.mrb[5].mxu0 }
 0x26e   :  { %v1266_v8 = vadd.f32 %v1258_v55, %v1250_v1  ;;  %v1368_v3 = vadd.f32 %v1238_v7, %v663_v50 }
 0x26f   :  { %1269 = vst [vmem:[%s1871_s7] sm:$0xff] %v1265_v5  ;;  %v1251_v10 = vadd.f32 %v1367_v63, %v1570_v45 }
 0x270   :  { %1270 = vst [vmem:[%s1871_s7 + $0x8] sm:$0xff] %v1266_v8  ;;  %v1252_v41 = vadd.f32 %v1368_v3, %v1573_v46 }
 0x271   :  { %v1267_v11 = vadd.f32 %v1263_v9, %v1251_v10 }
 0x272   :  { %v1268_v42 = vadd.f32 %v1263_v9, %v1252_v41 }
 0x273   :  { %1271 = vst [vmem:[%s1871_s7 + $0x10] sm:$0xff] %v1267_v11 }
 0x274   :  { %1272 = vst [vmem:[%s1871_s7 + $0x18] sm:$0xff] %v1268_v42 }

</bundles_post_ra>
